<compile_context>
chip_gen: v6e
topology: v6e:2x2x1
jax: 0.10.0
libtpu: 0.0.40
codegen_flags: <defaults>
</compile_context>

<pallas_src>
import jax
import jax.numpy as jnp
from jax.experimental import pallas as pl
from jax.experimental.pallas import tpu as pltpu

KSIZE = 4        # Conv2d kernel is (1, 4)
NACT = 9         # l3 out_features (number of actions)
LANES = 128      # lane-dense padded width for the MLP / output
NEG_BIG = -1e9   # pad-lane logit -> softmax weight exactly 0


def _round_up(x, m):
    return ((x + m - 1) // m) * m


def pack_policy_params(params, max_object, unit_1, unit_2):
    """Pack conv scalars + w1/b1/w2/b2/w3/b3 into one (rows, 128) f32 slab.

    Called ONCE per parameter set (hoisted out of the per-call hot path).
    The slab is DMA'd to VMEM once per pallas_call and stays resident across
    grid steps (block-invariant index_map).
    """
    conv_w, conv_b, w1, b1, w2, b2, w3, b3 = params
    assert unit_1 <= LANES and unit_2 <= LANES and NACT <= LANES
    H = max_object
    r_w1 = 0
    r_b1 = _round_up(H, 8)
    r_w2 = r_b1 + 8
    r_b2 = r_w2 + LANES
    r_w3 = r_b2 + 8
    r_b3 = r_w3 + LANES
    rows = _round_up(r_b3 + 1, 8)
    # TODO(synk): slab could be packed tighter (unit_1/unit_2 rows for w2/w3
    # instead of 128) — low priority at current sizes; keeps K=128 MXU dots.

    slab = jnp.zeros((rows, LANES), jnp.float32)
    slab = slab.at[r_w1:r_w1 + H, :unit_1].set(w1.astype(jnp.float32))
    slab = slab.at[r_b1, :unit_1].set(b1.reshape(-1).astype(jnp.float32))
    slab = slab.at[r_w2:r_w2 + unit_1, :unit_2].set(w2.astype(jnp.float32))
    slab = slab.at[r_b2, :unit_2].set(b2.reshape(-1).astype(jnp.float32))
    # w3 pad columns (lanes NACT:128) must stay exactly zero so the -1e9 bias
    # row below yields exactly-zero softmax mass on pad lanes.
    slab = slab.at[r_w3:r_w3 + unit_2, :NACT].set(w3.astype(jnp.float32))
    b3_row = jnp.full((LANES,), NEG_BIG, jnp.float32).at[:NACT].set(
        b3.reshape(-1).astype(jnp.float32))
    slab = slab.at[r_b3, :].set(b3_row)

    conv_p = jnp.concatenate(
        [conv_w.reshape(-1), conv_b.reshape(-1)]).astype(jnp.float32)
    offs = dict(w1=r_w1, b1=r_b1, w2=r_w2, b2=r_b2, w3=r_w3, b3=r_b3)
    return dict(conv=conv_p, slab=slab, offs=offs,
                max_object=max_object, unit_1=unit_1, unit_2=unit_2)


def _make_kernel(H, Wout, offs):
    def kernel(conv_ref, x_ref, w_ref, out_ref):
        # conv_ref: SMEM (KSIZE+1,)   -> [w0, w1, w2, w3, bias]
        # x_ref:    VMEM (TB, W_pad, H) per-map pre-transposed input maps
        # w_ref:    VMEM (rows, 128)  -> packed MLP weights (block-invariant)
        # out_ref:  VMEM (TB*Wout, 128)
        TB = x_ref.shape[0]
        x = x_ref[...]

        # Conv2d(1, 1, (1, 4)): 4 taps as static sublane-offset slices.
        # TODO(synk): could route the shifts through pltpu.roll (XLU slot)
        # instead of shifted slices; kept as slices for lowering robustness —
        # the review flags this as a small win only.
        acc = conv_ref[0] * x[:, 0:Wout, :]
        for k in range(1, KSIZE):
            acc = acc + conv_ref[k] * x[:, k:k + Wout, :]
        # + conv bias, ReLU; rows are already (conv position, max_object).
        # Wout is a multiple of 8, so this reshape is layout-free.
        ct = jnp.maximum(acc + conv_ref[KSIZE], 0.0).reshape(TB * Wout, H)

        # l1 -> relu -> l2 -> relu -> l3 (all 2-D MXU matmuls, f32 accumulate).
        w1 = w_ref[offs["w1"]:offs["w1"] + H, :]
        b1 = w_ref[offs["b1"]:offs["b1"] + 1, :]
        h1 = jnp.maximum(
            jnp.dot(ct, w1, preferred_element_type=jnp.float32) + b1, 0.0)

        w2 = w_ref[offs["w2"]:offs["w2"] + LANES, :]
        b2 = w_ref[offs["b2"]:offs["b2"] + 1, :]
        h2 = jnp.maximum(
            jnp.dot(h1, w2, preferred_element_type=jnp.float32) + b2, 0.0)

        w3 = w_ref[offs["w3"]:offs["w3"] + LANES, :]
        b3 = w_ref[offs["b3"]:offs["b3"] + 1, :]
        logits = jnp.dot(h2, w3, preferred_element_type=jnp.float32) + b3

        # Stable softmax over the 128 padded lanes; pad lanes hold -1e9 logits
        # (zero w3 pad columns) so exp underflows to exactly 0 and the result
        # matches a 9-wide softmax.  Denominator handled as one EUP reciprocal
        # per row (exact, approx=False) + a VPU multiply instead of a
        # full-tile divide.
        m = jnp.max(logits, axis=-1, keepdims=True)
        e = jnp.exp(logits - m)
        denom = jnp.sum(e, axis=-1, keepdims=True)
        out_ref[...] = e * pl.reciprocal(denom, approx=False)

    return kernel


def _choose_block_b(B):
    """Pick the per-grid-step batch block.

    Targets: M = block_b*Wout a multiple of 256 (full v6e/v7x MXU pass with
    Wout multiple of 8), grid length >= 2 when possible (v7x megacore), and a
    cap of 128 so total VMEM stays well under every chip's scoped default.
    """
    for cand in (128, 64, 32):
        if B >= 2 * cand:
            return cand
    return max(8, min(32, _round_up(max(B, 1), 8)))


def policy_forward_batched_padded(xb, packed, *, block_b=None):
    """Run the kernel; return the raw lane-dense padded output.

    xb: (B, H, W) float32 — B stacked (1, 1, H, W) maps (H = max_object).
    Returns (padded, B, Wout) where padded is (Bp, Wout_pad, 128); real
    probabilities live in padded[:B, :Wout, :NACT].  Use this entry point in
    throughput loops to avoid a second HBM slicing pass.
    """
    conv_p, slab, offs = packed["conv"], packed["slab"], packed["offs"]
    H = packed["max_object"]
    B, Hx, W = xb.shape
    assert Hx == H
    Wout = W - (KSIZE - 1)
    assert Wout >= 1
    # Keep the conv-position count a multiple of 8 so the in-kernel reshape of
    # the conv output is layout-free for any W (W=11 -> Wout=8 needs no pad).
    Wout_pad = _round_up(Wout, 8)
    W_pad = Wout_pad + (KSIZE - 1)

    if block_b is None:
        block_b = _choose_block_b(B)
    Bp = _round_up(B, block_b)

    # Pre-transpose each map to (W, H): wrapper-side layout plumbing so the
    # conv taps are sublane slices and no in-kernel transpose is needed.
    xt = jnp.transpose(xb, (0, 2, 1)).astype(jnp.float32)
    pad_b, pad_w = Bp - B, W_pad - W
    if pad_b or pad_w:
        xt = jnp.pad(xt, ((0, pad_b), (0, pad_w), (0, 0)))

    out = pl.pallas_call(
        _make_kernel(H, Wout_pad, offs),
        out_shape=jax.ShapeDtypeStruct((Bp * Wout_pad, LANES), jnp.float32),
        grid=(Bp // block_b,),
        in_specs=[
            pl.BlockSpec(memory_space=pltpu.MemorySpace.SMEM),       # conv scalars
            pl.BlockSpec((block_b, W_pad, H), lambda i: (i, 0, 0)),  # input maps
            pl.BlockSpec(slab.shape, lambda i: (0, 0)),              # weight slab (resident)
        ],
        out_specs=pl.BlockSpec((block_b * Wout_pad, LANES), lambda i: (i, 0)),
        compiler_params=pltpu.CompilerParams(
            dimension_semantics=("parallel",),   # shards grid across TCs on v7x
        ),
    )(conv_p, xt, slab)

    return out.reshape(Bp, Wout_pad, LANES), B, Wout


def policy_forward_batched(xb, packed, *, block_b=None):
    """Module-compatible batched forward: (B, H, W) -> (B, W-3, 9)."""
    padded, B, Wout = policy_forward_batched_padded(xb, packed, block_b=block_b)
    # NOTE: this slice is a second HBM pass over the padded output; throughput
    # consumers should read policy_forward_batched_padded() directly.
    return padded[:B, :Wout, :NACT]


def policy_forward(x, packed):
    """Original module signature: x (1, 1, H, W) -> (W - 3, 9)."""
    H = packed["max_object"]
    xb = x.reshape(1, H, x.shape[-1])
    return policy_forward_batched(xb, packed, block_b=1)[0]


def init_params(key, max_object, unit_1, unit_2):
    ks = jax.random.split(key, 8)
    s = 0.1
    conv_w = s * jax.random.normal(ks[0], (KSIZE,), jnp.float32)   # Conv2d weight (1,1,1,4)
    conv_b = s * jax.random.normal(ks[1], (1,), jnp.float32)       # Conv2d bias (1,)
    # Linear weights stored pre-transposed as (in, out); biases as (1, out).
    w1 = s * jax.random.normal(ks[2], (max_object, unit_1), jnp.float32)
    b1 = s * jax.random.normal(ks[3], (1, unit_1), jnp.float32)
    w2 = s * jax.random.normal(ks[4], (unit_1, unit_2), jnp.float32)
    b2 = s * jax.random.normal(ks[5], (1, unit_2), jnp.float32)
    w3 = s * jax.random.normal(ks[6], (unit_2, NACT), jnp.float32)
    b3 = s * jax.random.normal(ks[7], (1, NACT), jnp.float32)
    return (conv_w, conv_b, w1, b1, w2, b2, w3, b3)


def reference_forward_batched(xb, params):
    """Pure-JAX reference: xb (B, H, W) -> (B, W-3, 9)."""
    conv_w, conv_b, w1, b1, w2, b2, w3, b3 = params
    Wout = xb.shape[-1] - (KSIZE - 1)
    acc = conv_b[0]
    for k in range(KSIZE):
        acc = acc + conv_w[k] * xb[:, :, k:k + Wout]
    h = jnp.maximum(acc, 0.0)              # (B, H, Wout)
    h = jnp.swapaxes(h, 1, 2)              # (B, Wout, H)
    h1 = jnp.maximum(h @ w1 + b1, 0.0)
    h2 = jnp.maximum(h1 @ w2 + b2, 0.0)
    logits = h2 @ w3 + b3
    return jax.nn.softmax(logits, axis=-1)


if __name__ == "__main__":
    max_object, unit_1, unit_2 = 16, 32, 32
    W = 11          # conv output width Wout = 8
    B = 64          # batch of maps -> block_b=32 (M=256 per step), grid of 2

    key = jax.random.PRNGKey(0)
    pkey, xkey = jax.random.split(key)
    params = init_params(pkey, max_object, unit_1, unit_2)

    # Weight slab is packed ONCE (hoisted out of the per-call hot path).
    packed = pack_policy_params(params, max_object, unit_1, unit_2)

    xb = jax.random.normal(xkey, (B, 1, 1, max_object, W), jnp.float32)
    xb3 = xb.reshape(B, max_object, W)

    # Jitted batched forward (weights captured as constants; slab build stays
    # outside the traced hot path).
    fwd = jax.jit(lambda x: policy_forward_batched(x, packed))
    out = jax.block_until_ready(fwd(xb3))
    ref = reference_forward_batched(xb3, params)

    assert out.shape == (B, W - (KSIZE - 1), NACT)
    assert jnp.allclose(out, ref, atol=1e-4, rtol=1e-4), \
        float(jnp.max(jnp.abs(out - ref)))
    assert jnp.allclose(jnp.sum(out, axis=-1), 1.0, atol=1e-5)

    # Original single-map (1,1,H,W) module signature still supported.
    out1 = jax.block_until_ready(policy_forward(xb[0], packed))
    assert out1.shape == (W - (KSIZE - 1), NACT)
    assert jnp.allclose(out1, ref[0], atol=1e-4, rtol=1e-4)

    print("KERNEL_OK")
</pallas_src>

<mosaic_0001>
module attributes {stable_mosaic.version = 11 : i64} {
  func.func @kernel(%arg0: i32, %arg1: memref<5xf32, #tpu.memory_space<smem>>, %arg2: memref<32x11x16xf32, #tpu.memory_space<vmem>>, %arg3: memref<296x128xf32, #tpu.memory_space<vmem>>, %arg4: memref<256x128xf32, #tpu.memory_space<vmem>>) attributes {dimension_semantics = [#tpu.dimension_semantics<parallel>], iteration_bounds = array<i64: 2>, scalar_prefetch = 0 : i64, scratch_operands = 0 : i64, tpu.core_type = #tpu.core_type<tc>, window_params = [{transform_indices = @transform_0, window_bounds = array<i64: 5>}, {transform_indices = @transform_1, window_bounds = array<i64: 32, 11, 16>}, {pipeline_mode = #tpu.pipeline_mode<synchronous>, transform_indices = @transform_2, window_bounds = array<i64: 296, 128>}, {transform_indices = @transform_3, window_bounds = array<i64: 256, 128>}]} {
    %c0 = arith.constant 0 : index
    %c0_0 = arith.constant 0 : index
    %c0_1 = arith.constant 0 : index
    %0 = vector.load %arg2[%c0, %c0_0, %c0_1] : memref<32x11x16xf32, #tpu.memory_space<vmem>>, vector<32x11x16xf32>
    %c0_2 = arith.constant 0 : index
    %1 = memref.load %arg1[%c0_2] : memref<5xf32, #tpu.memory_space<smem>>
    %2 = vector.extract_strided_slice %0 {offsets = [0, 0, 0], sizes = [32, 8, 16], strides = [1, 1, 1]} : vector<32x11x16xf32> to vector<32x8x16xf32>
    %3 = vector.broadcast %1 : f32 to vector<32x8x16xf32>
    %4 = arith.mulf %3, %2 : vector<32x8x16xf32>
    %c1 = arith.constant 1 : index
    %5 = memref.load %arg1[%c1] : memref<5xf32, #tpu.memory_space<smem>>
    %6 = vector.extract_strided_slice %0 {offsets = [0, 1, 0], sizes = [32, 8, 16], strides = [1, 1, 1]} : vector<32x11x16xf32> to vector<32x8x16xf32>
    %7 = vector.broadcast %5 : f32 to vector<32x8x16xf32>
    %8 = arith.mulf %7, %6 : vector<32x8x16xf32>
    %9 = arith.addf %4, %8 : vector<32x8x16xf32>
    %c2 = arith.constant 2 : index
    %10 = memref.load %arg1[%c2] : memref<5xf32, #tpu.memory_space<smem>>
    %11 = vector.extract_strided_slice %0 {offsets = [0, 2, 0], sizes = [32, 8, 16], strides = [1, 1, 1]} : vector<32x11x16xf32> to vector<32x8x16xf32>
    %12 = vector.broadcast %10 : f32 to vector<32x8x16xf32>
    %13 = arith.mulf %12, %11 : vector<32x8x16xf32>
    %14 = arith.addf %9, %13 : vector<32x8x16xf32>
    %c3 = arith.constant 3 : index
    %15 = memref.load %arg1[%c3] : memref<5xf32, #tpu.memory_space<smem>>
    %16 = vector.extract_strided_slice %0 {offsets = [0, 3, 0], sizes = [32, 8, 16], strides = [1, 1, 1]} : vector<32x11x16xf32> to vector<32x8x16xf32>
    %17 = vector.broadcast %15 : f32 to vector<32x8x16xf32>
    %18 = arith.mulf %17, %16 : vector<32x8x16xf32>
    %19 = arith.addf %14, %18 : vector<32x8x16xf32>
    %c4 = arith.constant 4 : index
    %20 = memref.load %arg1[%c4] : memref<5xf32, #tpu.memory_space<smem>>
    %21 = vector.broadcast %20 : f32 to vector<32x8x16xf32>
    %22 = arith.addf %19, %21 : vector<32x8x16xf32>
    %cst = arith.constant 0.000000e+00 : f32
    %23 = vector.broadcast %cst : f32 to vector<32x8x16xf32>
    %24 = arith.maximumf %22, %23 : vector<32x8x16xf32>
    %25 = vector.shape_cast %24 : vector<32x8x16xf32> to vector<256x16xf32>
    %c0_3 = arith.constant 0 : index
    %c0_4 = arith.constant 0 : index
    %26 = vector.load %arg3[%c0_3, %c0_4] : memref<296x128xf32, #tpu.memory_space<vmem>>, vector<16x128xf32>
    %c16 = arith.constant 16 : index
    %c0_5 = arith.constant 0 : index
    %27 = vector.load %arg3[%c16, %c0_5] : memref<296x128xf32, #tpu.memory_space<vmem>>, vector<1x128xf32>
    %cst_6 = arith.constant dense<0.000000e+00> : vector<256x128xf32>
    %28 = tpu.matmul %25, %26, %cst_6 {dimension_numbers = #tpu.dot_dimension_numbers<[1], [0], [0], [1], [0, 0, 1, 1], [], []>} : vector<256x16xf32>, vector<16x128xf32>, vector<256x128xf32> -> vector<256x128xf32>
    %29 = vector.broadcast %27 : vector<1x128xf32> to vector<256x128xf32>
    %30 = arith.addf %28, %29 : vector<256x128xf32>
    %cst_7 = arith.constant 0.000000e+00 : f32
    %31 = vector.broadcast %cst_7 : f32 to vector<256x128xf32>
    %32 = arith.maximumf %30, %31 : vector<256x128xf32>
    %c24 = arith.constant 24 : index
    %c0_8 = arith.constant 0 : index
    %33 = vector.load %arg3[%c24, %c0_8] : memref<296x128xf32, #tpu.memory_space<vmem>>, vector<128x128xf32>
    %c152 = arith.constant 152 : index
    %c0_9 = arith.constant 0 : index
    %34 = vector.load %arg3[%c152, %c0_9] : memref<296x128xf32, #tpu.memory_space<vmem>>, vector<1x128xf32>
    %cst_10 = arith.constant dense<0.000000e+00> : vector<256x128xf32>
    %35 = tpu.matmul %32, %33, %cst_10 {dimension_numbers = #tpu.dot_dimension_numbers<[1], [0], [0], [1], [0, 0, 1, 1], [], []>} : vector<256x128xf32>, vector<128x128xf32>, vector<256x128xf32> -> vector<256x128xf32>
    %36 = vector.broadcast %34 : vector<1x128xf32> to vector<256x128xf32>
    %37 = arith.addf %35, %36 : vector<256x128xf32>
    %cst_11 = arith.constant 0.000000e+00 : f32
    %38 = vector.broadcast %cst_11 : f32 to vector<256x128xf32>
    %39 = arith.maximumf %37, %38 : vector<256x128xf32>
    %c160 = arith.constant 160 : index
    %c0_12 = arith.constant 0 : index
    %40 = vector.load %arg3[%c160, %c0_12] : memref<296x128xf32, #tpu.memory_space<vmem>>, vector<128x128xf32>
    %c288 = arith.constant 288 : index
    %c0_13 = arith.constant 0 : index
    %41 = vector.load %arg3[%c288, %c0_13] : memref<296x128xf32, #tpu.memory_space<vmem>>, vector<1x128xf32>
    %cst_14 = arith.constant dense<0.000000e+00> : vector<256x128xf32>
    %42 = tpu.matmul %39, %40, %cst_14 {dimension_numbers = #tpu.dot_dimension_numbers<[1], [0], [0], [1], [0, 0, 1, 1], [], []>} : vector<256x128xf32>, vector<128x128xf32>, vector<256x128xf32> -> vector<256x128xf32>
    %43 = vector.broadcast %41 : vector<1x128xf32> to vector<256x128xf32>
    %44 = arith.addf %42, %43 : vector<256x128xf32>
    %cst_15 = arith.constant dense<0xFF800000> : vector<256xf32>
    %45 = vector.multi_reduction <maximumf>, %44, %cst_15 [1] : vector<256x128xf32> to vector<256xf32>
    %46 = vector.shape_cast %45 : vector<256xf32> to vector<256x1xf32>
    %47 = vector.broadcast %46 : vector<256x1xf32> to vector<256x128xf32>
    %48 = arith.subf %44, %47 : vector<256x128xf32>
    %49 = math.exp %48 : vector<256x128xf32>
    %cst_16 = arith.constant dense<0.000000e+00> : vector<256xf32>
    %50 = vector.multi_reduction <add>, %49, %cst_16 [1] : vector<256x128xf32> to vector<256xf32>
    %51 = vector.shape_cast %50 : vector<256xf32> to vector<256x1xf32>
    %52 = tpu.reciprocal %51 : vector<256x1xf32> -> vector<256x1xf32>
    %53 = vector.broadcast %52 : vector<256x1xf32> to vector<256x128xf32>
    %54 = arith.mulf %49, %53 : vector<256x128xf32>
    %c0_17 = arith.constant 0 : index
    %c0_18 = arith.constant 0 : index
    %55 = vector.load %arg4[%c0_17, %c0_18] : memref<256x128xf32, #tpu.memory_space<vmem>>, vector<256x128xf32>
    tpu.vector_store %arg4[%c0_17, %c0_18], %54 {strides = array<i32>} : memref<256x128xf32, #tpu.memory_space<vmem>>, vector<256x128xf32>,
    return
  }
  func.func @transform_0(%arg0: i32) -> i32 {
    %c0_i32 = arith.constant 0 : i32
    %c0_i32_0 = arith.constant 0 : i32
    return %c0_i32 : i32
  }
  func.func @transform_1(%arg0: i32) -> (i32, i32, i32) {
    %c0_i32 = arith.constant 0 : i32
    %c0_i32_0 = arith.constant 0 : i32
    %c0_i32_1 = arith.constant 0 : i32
    return %arg0, %c0_i32, %c0_i32_0 : i32, i32, i32
  }
  func.func @transform_2(%arg0: i32) -> (i32, i32) {
    %c0_i32 = arith.constant 0 : i32
    %c0_i32_0 = arith.constant 0 : i32
    %c0_i32_1 = arith.constant 0 : i32
    return %c0_i32, %c0_i32_0 : i32, i32
  }
  func.func @transform_3(%arg0: i32) -> (i32, i32) {
    %c0_i32 = arith.constant 0 : i32
    %c0_i32_0 = arith.constant 0 : i32
    return %arg0, %c0_i32 : i32, i32
  }
}

</mosaic_0001>

<bundles_post_ra>
// kernel: _lambda_.1
= control target key start
LH: loop header
LB: loop body
LE: loop exit
PB: predicated region body
PF: predicated region fallthrough
CT: control target
= control target key end

     0   :  { %8 = vsyncpa [#allocation3], 0  ;;  %s3096_s12 = smov 0   ;;  %s4105_s0 = inlined_call_operand.vmem [shape: f32[5], index: 0, kind: input, shape index: {}]   ;;  %s4106_s1 = inlined_call_operand.vmem [shape: f32[64,11,16], index: 1, kind: input, shape index: {}]   ;;  %s4107_s2 = inlined_call_operand.vmem [shape: f32[296,128], index: 2, kind: input, shape index: {}]   ;;  %s4108_s3 = inlined_call_operand.vmem [shape: f32[512,128], index: 3, kind: output, shape index: {}]  }
   0x1 LB: > { %s2501_s13 = sadd.s32 4294967295, %s3073_s12   ;;  %p2503_p0 = scmp.ge.s32.totalorder %s3073_s12, 1  ;;  %s3073_s12 = sphi %s3096_s12, %s14_s12  }
   0x2   : > { %p113_p1 = scmp.lt.s32.totalorder %s3073_s12, 3  ;;  %s126_s16 = sshll.u32 %s4105_s0, 4  ;;  %s127_s16 = int_to_ptr.vmem [resolvable:$true] %s126_s16 }
   0x3   : > { %p3111_p3 = scmp.eq.s32.totalorder %s2501_s13, 0  ;;  %s3048_s19 = scalar_lea.vmem %s127_s16, 16 }
   0x4   : > { %p3107_p2 = pnand %p2503_p0, %p113_p1  ;;  %p3049_p6 = scmp.ne.s32.totalorder %s127_s16, %s3048_s19 }
   0x5   : > { %p3056_p10 = scmp.lt.s32.totalorder %s127_s16, %s127_s16  ;;  %p3057_p11 = scmp.lt.s32.totalorder %s3048_s19, %s3048_s19 }
   0x6   : > { %p2905_p4 = pneg %p3107_p2 }
   0x7   : > { %p3058_p12 = por %p3057_p11, %p3056_p10 }
   0x8   : > { %p2906_p5 = pnand %p3111_p3, %p2905_p4 }
   0xa   : > { %p3050_p7 = pneg %p2906_p5 }
   0xc   : > { %p3051_p8 = pnand %p3050_p7, %p3049_p6 }
   0xe   : > { %p3052_p9 = pneg %p3051_p8 }
  0x10   : > { %p3059_p13 = pnand %p3058_p12, %p3052_p9 }
  0x12   : > { %3062 = shalt.err (!%p3059_p13)
}
  0x13   : > { %s3075_s20 = smov [#allocation2]   ;;  %152 = sbr.rel (%p3107_p2) target bundleno = 1119 (0x45f), region = 32 }
  0x14   : > { %2908 = dma.vmem_to_smem (!%p2906_p5), %s127_s16, 16, %s3075_s20, [#allocation3]  }
  0x18   : > { %3068 = dma.done.wait (%p3111_p3), [#allocation3], 16  }
  0x19   : > { %3070 = vsyncadd (%p3111_p3), [#allocation3], 4294967280 }
  0x1a   : > { %158 = sfence }
  0x1b   : > { %v1229_v0 = vld [vmem:[%s4107_s2 + $0x8] sm:$0xff]  ;;  %v1228_v1 = vld [vmem:[%s4107_s2] sm:$0xff]  ;;  %s2508_s25 = sshll.u32 %s2501_s13, 5  ;;  %s255_s26 = sld [smem:[#allocation2]]  ;;  %vm419_vm0 = vcmask 1046528   ;;  %vm710_vm1 = vcmask 1045504  }
  0x1c   : > { %2685 = vmatprep.subr.mxu0 %v1229_v0  ;;  %p179_p0 = scmp.lt.s32.totalorder %s2508_s25, 63  ;;  %s2513_s27 = sld [smem:[#allocation2 + $0x1]]  ;;  %2897 = vmatprep.subr.mxu1 %v1229_v0  ;;  %vm1001_vm2 = vcmask 1044480   ;;  %vm1235_vm3 = vcmask 130048  }
  0x1d   : > { %2686 = vmatpush3.msra.mxu0 %v1229_v0  ;;  %s2514_s28 = sld [smem:[#allocation2 + $0x2]]  ;;  %2899 = vmatpush3.msra.mxu1 %v1229_v0 }
  0x1e   : > { %2687 = vmatprep.subr.mxu0 %v1228_v1  ;;  %s4112_s25 = smov (!%p179_p0, %s2508_s25), 63  ;;  %2898 = vmatprep.subr.mxu1 %v1228_v1  ;;  %s2515_s29 = sld [smem:[#allocation2 + $0x3]] }
  0x1f   : > { %2688 = vmatpush3.msra.mxu0 %v1228_v1  ;;  %2900 = vmatpush3.msra.mxu1 %v1228_v1  ;;  %s2554_s30 = sshll.u32 %s4112_s25, 4  ;;  %s2516_s4 = sld [smem:[#allocation2 + $0x4]] }
  0x20   : > { %s3137_s7 = scalar_lea.vmem %s4106_s1, %s2554_s30  ;;  %s2512_s30 = sshll.u32 %s4112_s25, 3 }
  0x21   : > { %v3139_v2 = vstv %s255_s26  ;;  %v191_v3 = vld [vmem:[%s3137_s7] sm:$0xff]  ;;  %v192_v4 = vld [vmem:[%s3137_s7 + $0x8] sm:$0x7]  ;;  %v193_v6 = vld [vmem:[%s3137_s7 + $0x10] sm:$0xff]  ;;  %s4033_s6 = scalar_lea.vmem %s4108_s3, %s2512_s30 }
  0x22   : > { %v3143_v5 = vstv %s2513_s27  ;;  %v257_v7 = vmul.f32 %v3139_v2, %v191_v3  ;;  %v194_v11 = vld [vmem:[%s3137_s7 + $0x18] sm:$0x7]  ;;  %v258_v14 = vmul.f32 %v3139_v2, %v193_v6  ;;  %v195_v36 = vld [vmem:[%s3137_s7 + $0x20] sm:$0xff]  ;;  %v196_v37 = vld [vmem:[%s3137_s7 + $0x28] sm:$0x7] }
  0x23   : > { %v291_v8 = vmul.f32 %v3143_v5, %v191_v3  ;;  %v292_v9 = vmul.f32 %v3143_v5, %v192_v4  ;;  %v3149_v10 = vstv %s2514_s28  ;;  %v293_v15 = vmul.f32 %v3143_v5, %v193_v6  ;;  %v197_v58 = vld [vmem:[%s3137_s7 + $0x30] sm:$0xff]  ;;  %v198_v63 = vld [vmem:[%s3137_s7 + $0x38] sm:$0x7] }
  0x24   : > { %v582_v12 = vmul.f32 %v3149_v10, %v191_v3  ;;  %v583_v13 = vmul.f32 %v3149_v10, %v192_v4  ;;  %v3156_v18 = vstv %s2515_s29  ;;  %v294_v19 = vmul.f32 %v3143_v5, %v194_v11 }
  0x25   : > { %v420_v16 = vrot.slane %v291_v8, 1  ;;  %v421_v17 = vrot.slane %v292_v9, 1  ;;  %v873_v22 = vmul.f32 %v3156_v18, %v191_v3  ;;  %v874_v23 = vmul.f32 %v3156_v18, %v192_v4 }
  0x26   : > { %v711_v20 = vrot.slane %v582_v12, 2  ;;  %v712_v21 = vrot.slane %v583_v13, 2  ;;  %v3162_v25 = vstv %s2516_s4  ;;  %v423_v26 = vrot.slane %v293_v15, 1 }
  0x27   : > { %v422_v24 = vsel %vm419_vm0, %v420_v16, %v421_v17  ;;  %v424_v27 = vrot.slane %v294_v19, 1  ;;  %v1002_v30 = vrot.slane %v873_v22, 3  ;;  %v1003_v31 = vrot.slane %v874_v23, 3 }
  0x28   : > { %v548_v28 = vadd.f32 %v422_v24, %v257_v7  ;;  %v713_v29 = vsel %vm710_vm1, %v711_v20, %v712_v21  ;;  %v584_v33 = vmul.f32 %v3149_v10, %v193_v6  ;;  %v585_v34 = vmul.f32 %v3149_v10, %v194_v11  ;;  %v199_v20 = vld [vmem:[%s3137_s7 + $0x40] sm:$0xff]  ;;  %v200_v21 = vld [vmem:[%s3137_s7 + $0x48] sm:$0x7] }
  0x29   : > { %v425_v32 = vsel %vm419_vm0, %v423_v26, %v424_v27  ;;  %v875_v35 = vmul.f32 %v3156_v18, %v193_v6  ;;  %v1004_v39 = vsel %vm1001_vm2, %v1002_v30, %v1003_v31  ;;  %v876_v41 = vmul.f32 %v3156_v18, %v194_v11 }
  0x2a   : > { %v839_v38 = vadd.f32 %v713_v29, %v548_v28  ;;  %v549_v40 = vadd.f32 %v425_v32, %v258_v14  ;;  %v714_v42 = vrot.slane %v584_v33, 2  ;;  %v715_v43 = vrot.slane %v585_v34, 2 }
  0x2b   : > { %v1005_v44 = vrot.slane %v875_v35, 3  ;;  %v259_v45 = vmul.f32 %v3139_v2, %v195_v36  ;;  %v1006_v47 = vrot.slane %v876_v41, 3  ;;  %v295_v48 = vmul.f32 %v3143_v5, %v195_v36 }
  0x2c   : > { %v1130_v46 = vadd.f32 %v1004_v39, %v839_v38  ;;  %v296_v49 = vmul.f32 %v3143_v5, %v196_v37  ;;  %v716_v50 = vsel %vm710_vm1, %v714_v42, %v715_v43  ;;  %v586_v51 = vmul.f32 %v3149_v10, %v195_v36 }
  0x2d   : > { %v587_v52 = vmul.f32 %v3149_v10, %v196_v37  ;;  %v877_v53 = vmul.f32 %v3156_v18, %v195_v36  ;;  %v840_v55 = vadd.f32 %v716_v50, %v549_v40  ;;  %v1007_v56 = vsel %vm1001_vm2, %v1005_v44, %v1006_v47  ;;  %v201_v47 = vld [vmem:[%s3137_s7 + $0x50] sm:$0xff] }
  0x2e   : > { %v1164_v54 = vadd.f32 %v3162_v25, %v1130_v46  ;;  %v426_v57 = vrot.slane %v295_v48, 1  ;;  %v427_v59 = vrot.slane %v296_v49, 1  ;;  %v717_v60 = vrot.slane %v586_v51, 2  ;;  %v202_v48 = vld [vmem:[%s3137_s7 + $0x58] sm:$0x7] }
  0x2f   : > { %v718_v61 = vrot.slane %v587_v52, 2  ;;  %v878_v62 = vmul.f32 %v3156_v18, %v196_v37  ;;  %v1131_v1 = vadd.f32 %v1007_v56, %v840_v55  ;;  %v1008_v3 = vrot.slane %v877_v53, 3 }
  0x30   : > { %v1196_v0 = vmax.f32 %v1164_v54, 0.0  ;;  %v260_v4 = vmul.f32 %v3139_v2, %v197_v58  ;;  %v428_v6 = vsel %vm419_vm0, %v426_v57, %v427_v59  ;;  %v297_v9 = vmul.f32 %v3143_v5, %v197_v58 }
  0x31   : > { %v719_v7 = vsel %vm710_vm1, %v717_v60, %v718_v61  ;;  %v1009_v8 = vrot.slane %v878_v62, 3  ;;  %v1165_v11 = vadd.f32 %v3162_v25, %v1131_v1  ;;  %v550_v12 = vadd.f32 %v428_v6, %v259_v45 }
  0x32   : > { %2689 = vmatprep.mubr.msk.f32.mxu0 %vm1235_vm3, %v1196_v0  ;;  %v298_v13 = vmul.f32 %v3143_v5, %v198_v63  ;;  %v588_v14 = vmul.f32 %v3149_v10, %v197_v58  ;;  %v429_v16 = vrot.slane %v297_v9, 1  ;;  %v589_v17 = vmul.f32 %v3149_v10, %v198_v63 }
  0x33   : > { %v1010_v15 = vsel %vm1001_vm2, %v1008_v3, %v1009_v8  ;;  %v879_v19 = vmul.f32 %v3156_v18, %v197_v58  ;;  %v1197_v22 = vmax.f32 %v1165_v11, 0.0  ;;  %v841_v23 = vadd.f32 %v719_v7, %v550_v12  ;;  %v203_v7 = vld [vmem:[%s3137_s7 + $0x60] sm:$0xff] }
  0x34   : > { %v430_v24 = vrot.slane %v298_v13, 1  ;;  %v720_v26 = vrot.slane %v588_v14, 2  ;;  %v721_v27 = vrot.slane %v589_v17, 2  ;;  %v880_v28 = vmul.f32 %v3156_v18, %v198_v63  ;;  %v204_v13 = vld [vmem:[%s3137_s7 + $0x68] sm:$0x7] }
  0x35   : > { %v1011_v29 = vrot.slane %v879_v19, 3  ;;  %v261_v30 = vmul.f32 %v3139_v2, %v199_v20  ;;  %2690 = vmatmul.mubr.msk.f32.vlgmr.msra.gmra.mxu0 %vm1235_vm3, %v1197_v22  ;;  %v1132_v31 = vadd.f32 %v1010_v15, %v841_v23  ;;  %v299_v33 = vmul.f32 %v3143_v5, %v199_v20 }
  0x36   : > { %v431_v32 = vsel %vm419_vm0, %v429_v16, %v430_v24  ;;  %v300_v34 = vmul.f32 %v3143_v5, %v200_v21  ;;  %v722_v36 = vsel %vm710_vm1, %v720_v26, %v721_v27  ;;  %v1012_v37 = vrot.slane %v880_v28, 3 }
  0x37   : > { %v551_v35 = vadd.f32 %v431_v32, %v260_v4  ;;  %v590_v38 = vmul.f32 %v3149_v10, %v199_v20  ;;  %v1166_v39 = vadd.f32 %v3162_v25, %v1132_v31  ;;  %v432_v40 = vrot.slane %v299_v33, 1  ;;  %v205_v32 = vld [vmem:[%s3137_s7 + $0x70] sm:$0xff]  ;;  %v206_v33 = vld [vmem:[%s3137_s7 + $0x78] sm:$0x7] }
  0x38   : > { %v433_v41 = vrot.slane %v300_v34, 1  ;;  %v591_v42 = vmul.f32 %v3149_v10, %v200_v21  ;;  %v1013_v44 = vsel %vm1001_vm2, %v1011_v29, %v1012_v37  ;;  %v881_v46 = vmul.f32 %v3156_v18, %v199_v20 }
  0x39   : > { %v842_v43 = vadd.f32 %v722_v36, %v551_v35  ;;  %v723_v45 = vrot.slane %v590_v38, 2  ;;  %v1198_v49 = vmax.f32 %v1166_v39, 0.0  ;;  %v882_v52 = vmul.f32 %v3156_v18, %v200_v21 }
  0x3a   : > { %v434_v50 = vsel %vm419_vm0, %v432_v40, %v433_v41  ;;  %v724_v51 = vrot.slane %v591_v42, 2  ;;  %v1014_v55 = vrot.slane %v881_v46, 3  ;;  %v262_v56 = vmul.f32 %v3139_v2, %v201_v47 }
  0x3b   : > { %v1133_v53 = vadd.f32 %v1013_v44, %v842_v43  ;;  %v552_v54 = vadd.f32 %v434_v50, %v261_v30  ;;  %2692 = vmatprep.mubr.msk.f32.mxu0 %vm1235_vm3, %v1198_v49  ;;  %v1015_v58 = vrot.slane %v882_v52, 3  ;;  %v301_v59 = vmul.f32 %v3143_v5, %v201_v47 }
  0x3c   : > { %v725_v57 = vsel %vm710_vm1, %v723_v45, %v724_v51  ;;  %v302_v60 = vmul.f32 %v3143_v5, %v202_v48  ;;  %v592_v63 = vmul.f32 %v3149_v10, %v201_v47  ;;  %v593_v0 = vmul.f32 %v3149_v10, %v202_v48 }
  0x3d   : > { %v1167_v61 = vadd.f32 %v3162_v25, %v1133_v53  ;;  %v843_v62 = vadd.f32 %v725_v57, %v552_v54  ;;  %v1016_v1 = vsel %vm1001_vm2, %v1014_v55, %v1015_v58  ;;  %v435_v3 = vrot.slane %v301_v59, 1  ;;  %v207_v54 = vld [vmem:[%s3137_s7 + $0x80] sm:$0xff]  ;;  %v208_v59 = vld [vmem:[%s3137_s7 + $0x88] sm:$0x7] }
  0x3e   : > { %v436_v4 = vrot.slane %v302_v60, 1  ;;  %v883_v6 = vmul.f32 %v3156_v18, %v201_v47  ;;  %v726_v11 = vrot.slane %v592_v63, 2  ;;  %v727_v12 = vrot.slane %v593_v0, 2 }
  0x3f   : > { %v1199_v8 = vmax.f32 %v1167_v61, 0.0  ;;  %v1134_v9 = vadd.f32 %v1016_v1, %v843_v62  ;;  %v884_v15 = vmul.f32 %v3156_v18, %v202_v48  ;;  %v263_v17 = vmul.f32 %v3139_v2, %v203_v7 }
  0x40   : > { %v437_v14 = vsel %vm419_vm0, %v435_v3, %v436_v4  ;;  %v1017_v16 = vrot.slane %v883_v6, 3  ;;  %v728_v21 = vsel %vm710_vm1, %v726_v11, %v727_v12  ;;  %v303_v22 = vmul.f32 %v3143_v5, %v203_v7 }
  0x41   : > { %2693 = vmatmul.mubr.msk.f32.gmra.mxu0 %vm1235_vm3, %v1199_v8  ;;  %v1168_v19 = vadd.f32 %v3162_v25, %v1134_v9  ;;  %v553_v20 = vadd.f32 %v437_v14, %v262_v56  ;;  %v1018_v23 = vrot.slane %v884_v15, 3  ;;  %v304_v24 = vmul.f32 %v3143_v5, %v204_v13  ;;  %v209_v15 = vld [vmem:[%s3137_s7 + $0x90] sm:$0xff] }
  0x42   : > { %v594_v26 = vmul.f32 %v3149_v10, %v203_v7  ;;  %v595_v27 = vmul.f32 %v3149_v10, %v204_v13  ;;  %v438_v30 = vrot.slane %v303_v22, 1  ;;  %v885_v31 = vmul.f32 %v3156_v18, %v203_v7 }
  0x43   : > { %v1200_v28 = vmax.f32 %v1168_v19, 0.0  ;;  %v844_v29 = vadd.f32 %v728_v21, %v553_v20  ;;  %v1019_v34 = vsel %vm1001_vm2, %v1017_v16, %v1018_v23  ;;  %v439_v35 = vrot.slane %v304_v24, 1 }
  0x44   : > { %v729_v36 = vrot.slane %v594_v26, 2  ;;  %v730_v37 = vrot.slane %v595_v27, 2  ;;  %v886_v39 = vmul.f32 %v3156_v18, %v204_v13  ;;  %v1020_v40 = vrot.slane %v885_v31, 3  ;;  %v210_v26 = vld [vmem:[%s3137_s7 + $0x98] sm:$0x7] }
  0x45   : > { %2695 = vmatprep.mubr.msk.f32.mxu0 %vm1235_vm3, %v1200_v28  ;;  %v1135_v38 = vadd.f32 %v1019_v34, %v844_v29  ;;  %v264_v41 = vmul.f32 %v3139_v2, %v205_v32  ;;  %v440_v42 = vsel %vm419_vm0, %v438_v30, %v439_v35  ;;  %v305_v44 = vmul.f32 %v3143_v5, %v205_v32 }
  0x46   : > { %v731_v43 = vsel %vm710_vm1, %v729_v36, %v730_v37  ;;  %v306_v45 = vmul.f32 %v3143_v5, %v206_v33  ;;  %v554_v47 = vadd.f32 %v440_v42, %v263_v17  ;;  %v1021_v48 = vrot.slane %v886_v39, 3  ;;  %v211_v39 = vld [vmem:[%s3137_s7 + $0xa0] sm:$0xff] }
  0x47   : > { %v1169_v46 = vadd.f32 %v3162_v25, %v1135_v38  ;;  %v596_v49 = vmul.f32 %v3149_v10, %v205_v32  ;;  %v441_v50 = vrot.slane %v305_v44, 1  ;;  %v597_v52 = vmul.f32 %v3149_v10, %v206_v33  ;;  %v212_v44 = vld [vmem:[%s3137_s7 + $0xa8] sm:$0x7] }
  0x48   : > { %v442_v51 = vrot.slane %v306_v45, 1  ;;  %v887_v53 = vmul.f32 %v3156_v18, %v205_v32  ;;  %v845_v56 = vadd.f32 %v731_v43, %v554_v47  ;;  %v1022_v57 = vsel %vm1001_vm2, %v1020_v40, %v1021_v48  ;;  %v3285_v45 = vld [vmem:[%s4107_s2 + $0x90] sm:$0xff] }
  0x49   : > { %v1201_v55 = vmax.f32 %v1169_v46, 0.0  ;;  %v732_v58 = vrot.slane %v596_v49, 2  ;;  %v733_v61 = vrot.slane %v597_v52, 2  ;;  %v888_v62 = vmul.f32 %v3156_v18, %v206_v33  ;;  %2737 = vmatprep.subr.mxu1 %v3285_v45 }
  0x4a   : > { %v443_v60 = vsel %vm419_vm0, %v441_v50, %v442_v51  ;;  %v1023_v63 = vrot.slane %v887_v53, 3  ;;  %v1136_v0 = vadd.f32 %v1022_v57, %v845_v56  ;;  %v265_v3 = vmul.f32 %v3139_v2, %v207_v54 }
  0x4b   : > { %2696 = vmatmul.mubr.msk.f32.gmra.mxu0 %vm1235_vm3, %v1201_v55  ;;  %v555_v1 = vadd.f32 %v443_v60, %v264_v41  ;;  %v307_v4 = vmul.f32 %v3143_v5, %v207_v54  ;;  %v734_v6 = vsel %vm710_vm1, %v732_v58, %v733_v61  ;;  %v1024_v7 = vrot.slane %v888_v62, 3 }
  0x4c   : > { %v308_v8 = vmul.f32 %v3143_v5, %v208_v59  ;;  %v598_v9 = vmul.f32 %v3149_v10, %v207_v54  ;;  %v1170_v11 = vadd.f32 %v3162_v25, %v1136_v0  ;;  %v599_v14 = vmul.f32 %v3149_v10, %v208_v59 }
  0x4d   : > { %v846_v12 = vadd.f32 %v734_v6, %v555_v1  ;;  %v444_v13 = vrot.slane %v307_v4, 1  ;;  %v1025_v16 = vsel %vm1001_vm2, %v1023_v63, %v1024_v7  ;;  %v889_v20 = vmul.f32 %v3156_v18, %v207_v54 }
  0x4e   : > { %v445_v17 = vrot.slane %v308_v8, 1  ;;  %v735_v19 = vrot.slane %v598_v9, 2  ;;  %v1202_v21 = vmax.f32 %v1170_v11, 0.0  ;;  %v736_v23 = vrot.slane %v599_v14, 2  ;;  %v214_v9 = vld [vmem:[%s3137_s7 + $0xb8] sm:$0x7] }
  0x4f   : > { %v1137_v22 = vadd.f32 %v1025_v16, %v846_v12  ;;  %v890_v24 = vmul.f32 %v3156_v18, %v208_v59  ;;  %v1026_v28 = vrot.slane %v889_v20, 3  ;;  %v266_v29 = vmul.f32 %v3139_v2, %v209_v15 }
  0x50   : > { %v446_v27 = vsel %vm419_vm0, %v444_v13, %v445_v17  ;;  %v309_v30 = vmul.f32 %v3143_v5, %v209_v15  ;;  %2698 = vmatprep.mubr.msk.f32.mxu0 %vm1235_vm3, %v1202_v21  ;;  %v737_v33 = vsel %vm710_vm1, %v735_v19, %v736_v23  ;;  %v310_v35 = vmul.f32 %v3143_v5, %v210_v26 }
  0x51   : > { %v1171_v31 = vadd.f32 %v3162_v25, %v1137_v22  ;;  %v556_v32 = vadd.f32 %v446_v27, %v265_v3  ;;  %v1027_v34 = vrot.slane %v890_v24, 3  ;;  %v600_v37 = vmul.f32 %v3149_v10, %v209_v15  ;;  %v213_v3 = vld [vmem:[%s3137_s7 + $0xb0] sm:$0xff] }
  0x52   : > { %v447_v36 = vrot.slane %v309_v30, 1  ;;  %v601_v38 = vmul.f32 %v3149_v10, %v210_v26  ;;  %v891_v43 = vmul.f32 %v3156_v18, %v209_v15  ;;  %v448_v46 = vrot.slane %v310_v35, 1 }
  0x53   : > { %v1203_v40 = vmax.f32 %v1171_v31, 0.0  ;;  %v847_v41 = vadd.f32 %v737_v33, %v556_v32  ;;  %v1028_v42 = vsel %vm1001_vm2, %v1026_v28, %v1027_v34  ;;  %v738_v47 = vrot.slane %v600_v37, 2  ;;  %v216_v34 = vld [vmem:[%s3137_s7 + $0xc8] sm:$0x7] }
  0x54   : > { %v739_v48 = vrot.slane %v601_v38, 2  ;;  %v892_v49 = vmul.f32 %v3156_v18, %v210_v26  ;;  %v1029_v51 = vrot.slane %v891_v43, 3  ;;  %v267_v52 = vmul.f32 %v3139_v2, %v211_v39 }
  0x55   : > { %2699 = vmatmul.mubr.msk.f32.gmra.mxu0 %vm1235_vm3, %v1203_v40  ;;  %v1138_v50 = vadd.f32 %v1028_v42, %v847_v41  ;;  %v311_v53 = vmul.f32 %v3143_v5, %v211_v39  ;;  %v449_v54 = vsel %vm419_vm0, %v447_v36, %v448_v46  ;;  %v312_v57 = vmul.f32 %v3143_v5, %v212_v44 }
  0x56   : > { %v740_v55 = vsel %vm710_vm1, %v738_v47, %v739_v48  ;;  %v1030_v56 = vrot.slane %v892_v49, 3  ;;  %v557_v59 = vadd.f32 %v449_v54, %v266_v29  ;;  %v602_v61 = vmul.f32 %v3149_v10, %v211_v39  ;;  %v215_v29 = vld [vmem:[%s3137_s7 + $0xc0] sm:$0xff] }
  0x57   : > { %v1172_v58 = vadd.f32 %v3162_v25, %v1138_v50  ;;  %v450_v60 = vrot.slane %v311_v53, 1  ;;  %v451_v63 = vrot.slane %v312_v57, 1  ;;  %v603_v0 = vmul.f32 %v3149_v10, %v212_v44  ;;  %v218_v57 = vld [vmem:[%s3137_s7 + $0xd8] sm:$0x7] }
  0x58   : > { %v1031_v62 = vsel %vm1001_vm2, %v1029_v51, %v1030_v56  ;;  %v893_v1 = vmul.f32 %v3156_v18, %v211_v39  ;;  %v848_v6 = vadd.f32 %v740_v55, %v557_v59  ;;  %v741_v7 = vrot.slane %v602_v61, 2 }
  0x59   : > { %v1204_v4 = vmax.f32 %v1172_v58, 0.0  ;;  %v894_v8 = vmul.f32 %v3156_v18, %v212_v44  ;;  %v452_v11 = vsel %vm419_vm0, %v450_v60, %v451_v63  ;;  %v742_v12 = vrot.slane %v603_v0, 2 }
  0x5a   : > { %v1032_v13 = vrot.slane %v893_v1, 3  ;;  %v268_v14 = vmul.f32 %v3139_v2, %v213_v3  ;;  %v1139_v15 = vadd.f32 %v1031_v62, %v848_v6  ;;  %v558_v16 = vadd.f32 %v452_v11, %v267_v52  ;;  %v217_v52 = vld [vmem:[%s3137_s7 + $0xd0] sm:$0xff] }
  0x5b   : > { %2701 = vmatprep.mubr.msk.f32.mxu0 %vm1235_vm3, %v1204_v4  ;;  %v1033_v17 = vrot.slane %v894_v8, 3  ;;  %v313_v19 = vmul.f32 %v3143_v5, %v213_v3  ;;  %v743_v20 = vsel %vm710_vm1, %v741_v7, %v742_v12  ;;  %v314_v21 = vmul.f32 %v3143_v5, %v214_v9 }
  0x5c   : > { %v604_v22 = vmul.f32 %v3149_v10, %v213_v3  ;;  %v605_v23 = vmul.f32 %v3149_v10, %v214_v9  ;;  %v1173_v24 = vadd.f32 %v3162_v25, %v1139_v15  ;;  %v849_v26 = vadd.f32 %v743_v20, %v558_v16 }
  0x5d   : > { %v1034_v27 = vsel %vm1001_vm2, %v1032_v13, %v1033_v17  ;;  %v453_v28 = vrot.slane %v313_v19, 1  ;;  %v454_v30 = vrot.slane %v314_v21, 1  ;;  %v895_v33 = vmul.f32 %v3156_v18, %v213_v3  ;;  %v219_v17 = vld [vmem:[%s3137_s7 + $0xe0] sm:$0xff] }
  0x5e   : > { %v744_v31 = vrot.slane %v604_v22, 2  ;;  %v745_v32 = vrot.slane %v605_v23, 2  ;;  %v1205_v35 = vmax.f32 %v1173_v24, 0.0  ;;  %v1140_v36 = vadd.f32 %v1034_v27, %v849_v26  ;;  %v220_v23 = vld [vmem:[%s3137_s7 + $0xe8] sm:$0x7] }
  0x5f   : > { %v896_v37 = vmul.f32 %v3156_v18, %v214_v9  ;;  %v269_v38 = vmul.f32 %v3139_v2, %v215_v29  ;;  %v455_v39 = vsel %vm419_vm0, %v453_v28, %v454_v30  ;;  %v1035_v41 = vrot.slane %v895_v33, 3 }
  0x60   : > { %v746_v40 = vsel %vm710_vm1, %v744_v31, %v745_v32  ;;  %v315_v42 = vmul.f32 %v3143_v5, %v215_v29  ;;  %2702 = vmatmul.mubr.msk.f32.gmra.mxu0 %vm1235_vm3, %v1205_v35  ;;  %v1174_v43 = vadd.f32 %v3162_v25, %v1140_v36  ;;  %v559_v44 = vadd.f32 %v455_v39, %v268_v14 }
  0x61   : > { %v1036_v46 = vrot.slane %v896_v37, 3  ;;  %v316_v47 = vmul.f32 %v3143_v5, %v216_v34  ;;  %v606_v49 = vmul.f32 %v3149_v10, %v215_v29  ;;  %v607_v50 = vmul.f32 %v3149_v10, %v216_v34 }
  0x62   : > { %v456_v48 = vrot.slane %v315_v42, 1  ;;  %v897_v51 = vmul.f32 %v3156_v18, %v215_v29  ;;  %v1206_v53 = vmax.f32 %v1174_v43, 0.0  ;;  %v850_v54 = vadd.f32 %v746_v40, %v559_v44  ;;  %v222_v42 = vld [vmem:[%s3137_s7 + $0xf8] sm:$0x7] }
  0x63   : > { %v1037_v55 = vsel %vm1001_vm2, %v1035_v41, %v1036_v46  ;;  %v457_v56 = vrot.slane %v316_v47, 1  ;;  %v747_v58 = vrot.slane %v606_v49, 2  ;;  %v748_v59 = vrot.slane %v607_v50, 2  ;;  %v221_v41 = vld [vmem:[%s3137_s7 + $0xf0] sm:$0xff] }
  0x64   : > { %v898_v60 = vmul.f32 %v3156_v18, %v216_v34  ;;  %v1038_v61 = vrot.slane %v897_v51, 3  ;;  %2704 = vmatprep.mubr.msk.f32.mxu0 %vm1235_vm3, %v1206_v53  ;;  %v1141_v62 = vadd.f32 %v1037_v55, %v850_v54  ;;  %v270_v0 = vmul.f32 %v3139_v2, %v217_v52 }
  0x65   : > { %v458_v63 = vsel %vm419_vm0, %v456_v48, %v457_v56  ;;  %v317_v1 = vmul.f32 %v3143_v5, %v217_v52  ;;  %v749_v4 = vsel %vm710_vm1, %v747_v58, %v748_v59  ;;  %v318_v7 = vmul.f32 %v3143_v5, %v218_v57 }
  0x66   : > { %v560_v3 = vadd.f32 %v458_v63, %v269_v38  ;;  %v1039_v6 = vrot.slane %v898_v60, 3  ;;  %v1175_v8 = vadd.f32 %v3162_v25, %v1141_v62  ;;  %v608_v11 = vmul.f32 %v3149_v10, %v217_v52 }
  0x67   : > { %v459_v9 = vrot.slane %v317_v1, 1  ;;  %v609_v12 = vmul.f32 %v3149_v10, %v218_v57  ;;  %v460_v15 = vrot.slane %v318_v7, 1  ;;  %v899_v16 = vmul.f32 %v3156_v18, %v217_v52  ;;  %v224_v7 = vld [vmem:[%s3137_s7 + $0x108] sm:$0x7] }
  0x68   : > { %v851_v13 = vadd.f32 %v749_v4, %v560_v3  ;;  %v1040_v14 = vsel %vm1001_vm2, %v1038_v61, %v1039_v6  ;;  %v1207_v19 = vmax.f32 %v1175_v8, 0.0  ;;  %v750_v20 = vrot.slane %v608_v11, 2 }
  0x69   : > { %v751_v21 = vrot.slane %v609_v12, 2  ;;  %v900_v22 = vmul.f32 %v3156_v18, %v218_v57  ;;  %v461_v26 = vsel %vm419_vm0, %v459_v9, %v460_v15  ;;  %v1041_v27 = vrot.slane %v899_v16, 3 }
  0x6a   : > { %v1142_v24 = vadd.f32 %v1040_v14, %v851_v13  ;;  %v271_v28 = vmul.f32 %v3139_v2, %v219_v17  ;;  %2705 = vmatmul.mubr.msk.f32.gmra.mxu0 %vm1235_vm3, %v1207_v19  ;;  %v561_v29 = vadd.f32 %v461_v26, %v270_v0  ;;  %v319_v32 = vmul.f32 %v3143_v5, %v219_v17  ;;  %v223_v0 = vld [vmem:[%s3137_s7 + $0x100] sm:$0xff] }
  0x6b   : > { %v752_v30 = vsel %vm710_vm1, %v750_v20, %v751_v21  ;;  %v1042_v31 = vrot.slane %v900_v22, 3  ;;  %v320_v34 = vmul.f32 %v3143_v5, %v220_v23  ;;  %v610_v35 = vmul.f32 %v3149_v10, %v219_v17 }
  0x6c   : > { %v1176_v33 = vadd.f32 %v3162_v25, %v1142_v24  ;;  %v611_v36 = vmul.f32 %v3149_v10, %v220_v23  ;;  %v852_v37 = vadd.f32 %v752_v30, %v561_v29  ;;  %v462_v39 = vrot.slane %v319_v32, 1 }
  0x6d   : > { %v1043_v38 = vsel %vm1001_vm2, %v1041_v27, %v1042_v31  ;;  %v901_v40 = vmul.f32 %v3156_v18, %v219_v17  ;;  %v463_v44 = vrot.slane %v320_v34, 1  ;;  %v753_v46 = vrot.slane %v610_v35, 2  ;;  %v225_v27 = vld [vmem:[%s3137_s7 + $0x110] sm:$0xff] }
  0x6e   : > { %v1208_v43 = vmax.f32 %v1176_v33, 0.0  ;;  %v754_v47 = vrot.slane %v611_v36, 2  ;;  %v1143_v48 = vadd.f32 %v1043_v38, %v852_v37  ;;  %v902_v49 = vmul.f32 %v3156_v18, %v220_v23  ;;  %v226_v36 = vld [vmem:[%s3137_s7 + $0x118] sm:$0x7] }
  0x6f   : > { %v1044_v50 = vrot.slane %v901_v40, 3  ;;  %v272_v51 = vmul.f32 %v3139_v2, %v221_v41  ;;  %v464_v52 = vsel %vm419_vm0, %v462_v39, %v463_v44  ;;  %v321_v54 = vmul.f32 %v3143_v5, %v221_v41 }
  0x70   : > { %2707 = vmatprep.mubr.msk.f32.mxu0 %vm1235_vm3, %v1208_v43  ;;  %v755_v53 = vsel %vm710_vm1, %v753_v46, %v754_v47  ;;  %v322_v55 = vmul.f32 %v3143_v5, %v222_v42  ;;  %v1177_v56 = vadd.f32 %v3162_v25, %v1143_v48  ;;  %v562_v57 = vadd.f32 %v464_v52, %v271_v28 }
  0x71   : > { %v1045_v58 = vrot.slane %v902_v49, 3  ;;  %v612_v59 = vmul.f32 %v3149_v10, %v221_v41  ;;  %v465_v60 = vrot.slane %v321_v54, 1  ;;  %v613_v62 = vmul.f32 %v3149_v10, %v222_v42 }
  0x72   : > { %v466_v61 = vrot.slane %v322_v55, 1  ;;  %v903_v63 = vmul.f32 %v3156_v18, %v221_v41  ;;  %v1209_v1 = vmax.f32 %v1177_v56, 0.0  ;;  %v853_v3 = vadd.f32 %v755_v53, %v562_v57  ;;  %v228_v55 = vld [vmem:[%s3137_s7 + $0x128] sm:$0x7] }
  0x73   : > { %v1046_v4 = vsel %vm1001_vm2, %v1044_v50, %v1045_v58  ;;  %v756_v6 = vrot.slane %v612_v59, 2  ;;  %v757_v9 = vrot.slane %v613_v62, 2  ;;  %v904_v11 = vmul.f32 %v3156_v18, %v222_v42  ;;  %v227_v50 = vld [vmem:[%s3137_s7 + $0x120] sm:$0xff] }
  0x74   : > { %v467_v8 = vsel %vm419_vm0, %v465_v60, %v466_v61  ;;  %v1047_v12 = vrot.slane %v903_v63, 3  ;;  %2708 = vmatmul.mubr.msk.f32.gmra.mxu0 %vm1235_vm3, %v1209_v1  ;;  %v1144_v13 = vadd.f32 %v1046_v4, %v853_v3  ;;  %v273_v15 = vmul.f32 %v3139_v2, %v223_v0 }
  0x75   : > { %v563_v14 = vadd.f32 %v467_v8, %v272_v51  ;;  %v323_v16 = vmul.f32 %v3143_v5, %v223_v0  ;;  %v758_v17 = vsel %vm710_vm1, %v756_v6, %v757_v9  ;;  %v1048_v19 = vrot.slane %v904_v11, 3 }
  0x76   : > { %v324_v20 = vmul.f32 %v3143_v5, %v224_v7  ;;  %v614_v21 = vmul.f32 %v3149_v10, %v223_v0  ;;  %v1178_v22 = vadd.f32 %v3162_v25, %v1144_v13  ;;  %v615_v26 = vmul.f32 %v3149_v10, %v224_v7 }
  0x77   : > { %v854_v23 = vadd.f32 %v758_v17, %v563_v14  ;;  %v468_v24 = vrot.slane %v323_v16, 1  ;;  %v1049_v28 = vsel %vm1001_vm2, %v1047_v12, %v1048_v19  ;;  %v905_v31 = vmul.f32 %v3156_v18, %v223_v0 }
  0x78   : > { %v469_v29 = vrot.slane %v324_v20, 1  ;;  %v759_v30 = vrot.slane %v614_v21, 2  ;;  %v1210_v32 = vmax.f32 %v1178_v22, 0.0  ;;  %v760_v34 = vrot.slane %v615_v26, 2  ;;  %v230_v21 = vld [vmem:[%s3137_s7 + $0x138] sm:$0x7] }
  0x79   : > { %v1145_v33 = vadd.f32 %v1049_v28, %v854_v23  ;;  %v906_v35 = vmul.f32 %v3156_v18, %v224_v7  ;;  %v1050_v38 = vrot.slane %v905_v31, 3  ;;  %v274_v39 = vmul.f32 %v3139_v2, %v225_v27 }
  0x7a   : > { %v470_v37 = vsel %vm419_vm0, %v468_v24, %v469_v29  ;;  %v325_v40 = vmul.f32 %v3143_v5, %v225_v27  ;;  %2710 = vmatprep.mubr.msk.f32.mxu0 %vm1235_vm3, %v1210_v32  ;;  %v761_v43 = vsel %vm710_vm1, %v759_v30, %v760_v34  ;;  %v326_v46 = vmul.f32 %v3143_v5, %v226_v36 }
  0x7b   : > { %v1179_v41 = vadd.f32 %v3162_v25, %v1145_v33  ;;  %v564_v42 = vadd.f32 %v470_v37, %v273_v15  ;;  %v1051_v44 = vrot.slane %v906_v35, 3  ;;  %v616_v48 = vmul.f32 %v3149_v10, %v225_v27  ;;  %v229_v15 = vld [vmem:[%s3137_s7 + $0x130] sm:$0xff] }
  0x7c   : > { %v471_v47 = vrot.slane %v325_v40, 1  ;;  %v617_v49 = vmul.f32 %v3149_v10, %v226_v36  ;;  %v907_v54 = vmul.f32 %v3156_v18, %v225_v27  ;;  %v472_v56 = vrot.slane %v326_v46, 1 }
  0x7d   : > { %v1211_v51 = vmax.f32 %v1179_v41, 0.0  ;;  %v855_v52 = vadd.f32 %v761_v43, %v564_v42  ;;  %v1052_v53 = vsel %vm1001_vm2, %v1050_v38, %v1051_v44  ;;  %v762_v57 = vrot.slane %v616_v48, 2  ;;  %v232_v44 = vld [vmem:[%s3137_s7 + $0x148] sm:$0x7] }
  0x7e   : > { %v763_v58 = vrot.slane %v617_v49, 2  ;;  %v908_v59 = vmul.f32 %v3156_v18, %v226_v36  ;;  %v1053_v61 = vrot.slane %v907_v54, 3  ;;  %v275_v62 = vmul.f32 %v3139_v2, %v227_v50  ;;  %v1603_v54 = vld [vmem:[%s4107_s2 + $0x88] sm:$0xff] }
  0x7f   : > { %2711 = vmatmul.mubr.msk.f32.gmra.mxu0 %vm1235_vm3, %v1211_v51  ;;  %v1146_v60 = vadd.f32 %v1052_v53, %v855_v52  ;;  %v327_v63 = vmul.f32 %v3143_v5, %v227_v50  ;;  %v473_v0 = vsel %vm419_vm0, %v471_v47, %v472_v56  ;;  %v328_v4 = vmul.f32 %v3143_v5, %v228_v55 }
  0x80   : > { %v764_v1 = vsel %vm710_vm1, %v762_v57, %v763_v58  ;;  %v1054_v3 = vrot.slane %v908_v59, 3  ;;  %v565_v7 = vadd.f32 %v473_v0, %v274_v39  ;;  %v618_v9 = vmul.f32 %v3149_v10, %v227_v50  ;;  %v231_v39 = vld [vmem:[%s3137_s7 + $0x140] sm:$0xff] }
  0x81   : > { %v1180_v6 = vadd.f32 %v3162_v25, %v1146_v60  ;;  %v474_v8 = vrot.slane %v327_v63, 1  ;;  %v475_v12 = vrot.slane %v328_v4, 1  ;;  %v619_v13 = vmul.f32 %v3149_v10, %v228_v55  ;;  %v233_v63 = vld [vmem:[%s3137_s7 + $0x150] sm:$0xff] }
  0x82   : > { %v1055_v11 = vsel %vm1001_vm2, %v1053_v61, %v1054_v3  ;;  %v909_v14 = vmul.f32 %v3156_v18, %v227_v50  ;;  %v856_v17 = vadd.f32 %v764_v1, %v565_v7  ;;  %v765_v19 = vrot.slane %v618_v9, 2  ;;  %v1602_v7 = vld [vmem:[%s4107_s2 + $0x80] sm:$0xff] }
  0x83   : > { %v1212_v16 = vmax.f32 %v1180_v6, 0.0  ;;  %v910_v20 = vmul.f32 %v3156_v18, %v228_v55  ;;  %v476_v22 = vsel %vm419_vm0, %v474_v8, %v475_v12  ;;  %v766_v23 = vrot.slane %v619_v13, 2  ;;  %v234_v6 = vld [vmem:[%s3137_s7 + $0x158] sm:$0x7] }
  0x84   : > { %v1056_v24 = vrot.slane %v909_v14, 3  ;;  %v276_v26 = vmul.f32 %v3139_v2, %v229_v15  ;;  %v1147_v27 = vadd.f32 %v1055_v11, %v856_v17  ;;  %v566_v28 = vadd.f32 %v476_v22, %v275_v62 }
  0x85   : > { %2713 = vmatprep.mubr.msk.f32.mxu1 %vm1235_vm3, %v1212_v16  ;;  %v1057_v29 = vrot.slane %v910_v20, 3  ;;  %v329_v30 = vmul.f32 %v3143_v5, %v229_v15  ;;  %v767_v31 = vsel %vm710_vm1, %v765_v19, %v766_v23  ;;  %v330_v32 = vmul.f32 %v3143_v5, %v230_v21  ;;  %v1601_v16 = vld [vmem:[%s4107_s2 + $0x78] sm:$0xff] }
  0x86   : > { %v620_v33 = vmul.f32 %v3149_v10, %v229_v15  ;;  %v621_v34 = vmul.f32 %v3149_v10, %v230_v21  ;;  %v1181_v35 = vadd.f32 %v3162_v25, %v1147_v27  ;;  %v857_v36 = vadd.f32 %v767_v31, %v566_v28  ;;  %v1600_v27 = vld [vmem:[%s4107_s2 + $0x70] sm:$0xff] }
  0x87   : > { %v1058_v37 = vsel %vm1001_vm2, %v1056_v24, %v1057_v29  ;;  %v477_v38 = vrot.slane %v329_v30, 1  ;;  %v478_v40 = vrot.slane %v330_v32, 1  ;;  %v911_v43 = vmul.f32 %v3156_v18, %v229_v15  ;;  %v235_v32 = vld [vmem:[%s3137_s7 + $0x160] sm:$0xff] }
  0x88   : > { %v768_v41 = vrot.slane %v620_v33, 2  ;;  %v769_v42 = vrot.slane %v621_v34, 2  ;;  %v1213_v46 = vmax.f32 %v1181_v35, 0.0  ;;  %v1148_v47 = vadd.f32 %v1058_v37, %v857_v36  ;;  %v236_v37 = vld [vmem:[%s3137_s7 + $0x168] sm:$0x7] }
  0x89   : > { %v912_v48 = vmul.f32 %v3156_v18, %v230_v21  ;;  %v277_v49 = vmul.f32 %v3139_v2, %v231_v39  ;;  %v479_v50 = vsel %vm419_vm0, %v477_v38, %v478_v40  ;;  %v1059_v52 = vrot.slane %v911_v43, 3 }
  0x8a   : > { %v770_v51 = vsel %vm710_vm1, %v768_v41, %v769_v42  ;;  %v331_v53 = vmul.f32 %v3143_v5, %v231_v39  ;;  %2714 = vmatmul.mubr.msk.f32.vlgmr.msra.gmra.mxu1 %vm1235_vm3, %v1213_v46  ;;  %v1182_v55 = vadd.f32 %v3162_v25, %v1148_v47  ;;  %v567_v56 = vadd.f32 %v479_v50, %v276_v26  ;;  %v1599_v42 = vld [vmem:[%s4107_s2 + $0x68] sm:$0xff] }
  0x8b   : > { %v1060_v57 = vrot.slane %v912_v48, 3  ;;  %v332_v58 = vmul.f32 %v3143_v5, %v232_v44  ;;  %v622_v60 = vmul.f32 %v3149_v10, %v231_v39  ;;  %v623_v61 = vmul.f32 %v3149_v10, %v232_v44  ;;  %2738 = vmatpush3.msra.mxu1 %v3285_v45 }
  0x8c   : > { %v480_v59 = vrot.slane %v331_v53, 1  ;;  %v913_v62 = vmul.f32 %v3156_v18, %v231_v39  ;;  %v1214_v0 = vmax.f32 %v1182_v55, 0.0  ;;  %v858_v1 = vadd.f32 %v770_v51, %v567_v56  ;;  %2739 = vmatprep.subr.mxu1 %v1603_v54 }
  0x8d   : > { %v1061_v3 = vsel %vm1001_vm2, %v1059_v52, %v1060_v57  ;;  %v481_v4 = vrot.slane %v332_v58, 1  ;;  %v771_v8 = vrot.slane %v622_v60, 2  ;;  %v772_v9 = vrot.slane %v623_v61, 2  ;;  %2740 = vmatpush3.msra.mxu1 %v1603_v54  ;;  %v1598_v52 = vld [vmem:[%s4107_s2 + $0x60] sm:$0xff]  ;;  %v237_v57 = vld [vmem:[%s3137_s7 + $0x170] sm:$0xff] }
  0x8e   : > { %v914_v11 = vmul.f32 %v3156_v18, %v232_v44  ;;  %v1062_v12 = vrot.slane %v913_v62, 3  ;;  %2716 = vmatprep.mubr.msk.f32.mxu1 %vm1235_vm3, %v1214_v0  ;;  %v1149_v45 = vadd.f32 %v1061_v3, %v858_v1  ;;  %v278_v14 = vmul.f32 %v3139_v2, %v233_v63  ;;  %2741 = vmatprep.subr.mxu1 %v1602_v7  ;;  %v238_v58 = vld [vmem:[%s3137_s7 + $0x178] sm:$0x7] }
  0x8f   : > { %v482_v13 = vsel %vm419_vm0, %v480_v59, %v481_v4  ;;  %v333_v15 = vmul.f32 %v3143_v5, %v233_v63  ;;  %v773_v19 = vsel %vm710_vm1, %v771_v8, %v772_v9  ;;  %v334_v21 = vmul.f32 %v3143_v5, %v234_v6  ;;  %2742 = vmatpush3.msra.mxu1 %v1602_v7  ;;  %v1597_v4 = vld [vmem:[%s4107_s2 + $0x58] sm:$0xff] }
  0x90   : > { %v568_v17 = vadd.f32 %v482_v13, %v277_v49  ;;  %v1063_v20 = vrot.slane %v914_v11, 3  ;;  %v1183_v22 = vadd.f32 %v3162_v25, %v1149_v45  ;;  %v624_v24 = vmul.f32 %v3149_v10, %v233_v63  ;;  %2743 = vmatprep.subr.mxu1 %v1601_v16 }
  0x91   : > { %v483_v23 = vrot.slane %v333_v15, 1  ;;  %v625_v26 = vmul.f32 %v3149_v10, %v234_v6  ;;  %v484_v30 = vrot.slane %v334_v21, 1  ;;  %v915_v31 = vmul.f32 %v3156_v18, %v233_v63  ;;  %2744 = vmatpush3.msra.mxu1 %v1601_v16 }
  0x92   : > { %v859_v28 = vadd.f32 %v773_v19, %v568_v17  ;;  %v1064_v29 = vsel %vm1001_vm2, %v1062_v12, %v1063_v20  ;;  %v1215_v33 = vmax.f32 %v1183_v22, 0.0  ;;  %v774_v34 = vrot.slane %v624_v24, 2  ;;  %2745 = vmatprep.subr.mxu1 %v1600_v27  ;;  %v239_v20 = vld [vmem:[%s3137_s7 + $0x180] sm:$0xff] }
  0x93   : > { %v775_v35 = vrot.slane %v625_v26, 2  ;;  %v916_v36 = vmul.f32 %v3156_v18, %v234_v6  ;;  %v485_v39 = vsel %vm419_vm0, %v483_v23, %v484_v30  ;;  %v1065_v40 = vrot.slane %v915_v31, 3  ;;  %2746 = vmatpush3.msra.mxu1 %v1600_v27  ;;  %v240_v26 = vld [vmem:[%s3137_s7 + $0x188] sm:$0x7] }
  0x94   : > { %v1150_v38 = vadd.f32 %v1064_v29, %v859_v28  ;;  %v279_v41 = vmul.f32 %v3139_v2, %v235_v32  ;;  %2717 = vmatmul.mubr.msk.f32.gmra.mxu1 %vm1235_vm3, %v1215_v33  ;;  %v569_v43 = vadd.f32 %v485_v39, %v278_v14  ;;  %v335_v47 = vmul.f32 %v3143_v5, %v235_v32  ;;  %v1596_v14 = vld [vmem:[%s4107_s2 + $0x50] sm:$0xff]  ;;  %v1595_v31 = vld [vmem:[%s4107_s2 + $0x48] sm:$0xff] }
  0x95   : > { %v776_v44 = vsel %vm710_vm1, %v774_v34, %v775_v35  ;;  %v1066_v46 = vrot.slane %v916_v36, 3  ;;  %v336_v49 = vmul.f32 %v3143_v5, %v236_v37  ;;  %v626_v50 = vmul.f32 %v3149_v10, %v235_v32  ;;  %2747 = vmatprep.subr.mxu1 %v1599_v42 }
  0x96   : > { %v1184_v48 = vadd.f32 %v3162_v25, %v1150_v38  ;;  %v627_v51 = vmul.f32 %v3149_v10, %v236_v37  ;;  %v860_v53 = vadd.f32 %v776_v44, %v569_v43  ;;  %v486_v55 = vrot.slane %v335_v47, 1  ;;  %2748 = vmatpush3.msra.mxu1 %v1599_v42 }
  0x97   : > { %v1067_v54 = vsel %vm1001_vm2, %v1065_v40, %v1066_v46  ;;  %v917_v56 = vmul.f32 %v3156_v18, %v235_v32  ;;  %v487_v60 = vrot.slane %v336_v49, 1  ;;  %v777_v61 = vrot.slane %v626_v50, 2  ;;  %2749 = vmatprep.subr.mxu1 %v1598_v52  ;;  %v1594_v40 = vld [vmem:[%s4107_s2 + $0x40] sm:$0xff]  ;;  %v241_v46 = vld [vmem:[%s3137_s7 + $0x190] sm:$0xff] }
  0x98   : > { %v1216_v59 = vmax.f32 %v1184_v48, 0.0  ;;  %v778_v62 = vrot.slane %v627_v51, 2  ;;  %v1151_v63 = vadd.f32 %v1067_v54, %v860_v53  ;;  %v918_v0 = vmul.f32 %v3156_v18, %v236_v37  ;;  %2750 = vmatpush3.msra.mxu1 %v1598_v52  ;;  %v1593_v51 = vld [vmem:[%s4107_s2 + $0x38] sm:$0xff] }
  0x99   : > { %v1068_v1 = vrot.slane %v917_v56, 3  ;;  %v280_v3 = vmul.f32 %v3139_v2, %v237_v57  ;;  %v488_v6 = vsel %vm419_vm0, %v486_v55, %v487_v60  ;;  %v337_v8 = vmul.f32 %v3143_v5, %v237_v57  ;;  %2751 = vmatprep.subr.mxu1 %v1597_v4  ;;  %v242_v56 = vld [vmem:[%s3137_s7 + $0x198] sm:$0x7] }
  0x9a   : > { %2719 = vmatprep.mubr.msk.f32.mxu1 %vm1235_vm3, %v1216_v59  ;;  %v779_v7 = vsel %vm710_vm1, %v777_v61, %v778_v62  ;;  %v338_v9 = vmul.f32 %v3143_v5, %v238_v58  ;;  %v1185_v11 = vadd.f32 %v3162_v25, %v1151_v63  ;;  %v570_v12 = vadd.f32 %v488_v6, %v279_v41  ;;  %v1592_v61 = vld [vmem:[%s4107_s2 + $0x30] sm:$0xff] }
  0x9b   : > { %v1069_v45 = vrot.slane %v918_v0, 3  ;;  %v628_v13 = vmul.f32 %v3149_v10, %v237_v57  ;;  %v489_v15 = vrot.slane %v337_v8, 1  ;;  %v629_v17 = vmul.f32 %v3149_v10, %v238_v58  ;;  %2752 = vmatpush3.msra.mxu1 %v1597_v4  ;;  %v243_v8 = vld [vmem:[%s3137_s7 + $0x1a0] sm:$0xff] }
  0x9c   : > { %v490_v16 = vrot.slane %v338_v9, 1  ;;  %v919_v19 = vmul.f32 %v3156_v18, %v237_v57  ;;  %v1217_v21 = vmax.f32 %v1185_v11, 0.0  ;;  %v861_v22 = vadd.f32 %v779_v7, %v570_v12  ;;  %2753 = vmatprep.subr.mxu1 %v1596_v14  ;;  %v1591_v9 = vld [vmem:[%s4107_s2 + $0x28] sm:$0xff] }
  0x9d   : > { %v1070_v23 = vsel %vm1001_vm2, %v1068_v1, %v1069_v45  ;;  %v780_v24 = vrot.slane %v628_v13, 2  ;;  %v781_v28 = vrot.slane %v629_v17, 2  ;;  %v920_v29 = vmul.f32 %v3156_v18, %v238_v58  ;;  %2754 = vmatpush3.msra.mxu1 %v1596_v14  ;;  %v244_v14 = vld [vmem:[%s3137_s7 + $0x1a8] sm:$0x7] }
  0x9e   : > { %v491_v27 = vsel %vm419_vm0, %v489_v15, %v490_v16  ;;  %v1071_v30 = vrot.slane %v919_v19, 3  ;;  %2720 = vmatmul.mubr.msk.f32.gmra.mxu1 %vm1235_vm3, %v1217_v21  ;;  %v1152_v32 = vadd.f32 %v1070_v23, %v861_v22  ;;  %v281_v34 = vmul.f32 %v3139_v2, %v239_v20  ;;  %2755 = vmatprep.subr.mxu1 %v1595_v31 }
  0x9f   : > { %v571_v33 = vadd.f32 %v491_v27, %v280_v3  ;;  %v339_v35 = vmul.f32 %v3143_v5, %v239_v20  ;;  %v782_v36 = vsel %vm710_vm1, %v780_v24, %v781_v28  ;;  %v1072_v37 = vrot.slane %v920_v29, 3  ;;  %2756 = vmatpush3.msra.mxu1 %v1595_v31 }
  0xa0   : > { %v340_v38 = vmul.f32 %v3143_v5, %v240_v26  ;;  %v630_v39 = vmul.f32 %v3149_v10, %v239_v20  ;;  %v1186_v41 = vadd.f32 %v3162_v25, %v1152_v32  ;;  %v631_v44 = vmul.f32 %v3149_v10, %v240_v26  ;;  %2757 = vmatprep.subr.mxu1 %v1594_v40 }
  0xa1   : > { %v862_v42 = vadd.f32 %v782_v36, %v571_v33  ;;  %v492_v43 = vrot.slane %v339_v35, 1  ;;  %v1073_v47 = vsel %vm1001_vm2, %v1071_v30, %v1072_v37  ;;  %v921_v50 = vmul.f32 %v3156_v18, %v239_v20  ;;  %2758 = vmatpush3.msra.mxu1 %v1594_v40  ;;  %v1590_v20 = vld [vmem:[%s4107_s2 + $0x20] sm:$0xff]  ;;  %v1589_v30 = vld [vmem:[%s4107_s2 + $0x18] sm:$0xff] }
  0xa2   : > { %v493_v48 = vrot.slane %v340_v38, 1  ;;  %v783_v49 = vrot.slane %v630_v39, 2  ;;  %v1218_v52 = vmax.f32 %v1186_v41, 0.0  ;;  %v784_v54 = vrot.slane %v631_v44, 2  ;;  %2759 = vmatprep.subr.mxu1 %v1593_v51  ;;  %v245_v39 = vld [vmem:[%s3137_s7 + $0x1b0] sm:$0xff] }
  0xa3   : > { %v1153_v53 = vadd.f32 %v1073_v47, %v862_v42  ;;  %v922_v55 = vmul.f32 %v3156_v18, %v240_v26  ;;  %v1074_v58 = vrot.slane %v921_v50, 3  ;;  %v282_v59 = vmul.f32 %v3139_v2, %v241_v46  ;;  %2760 = vmatpush3.msra.mxu1 %v1593_v51  ;;  %v246_v44 = vld [vmem:[%s3137_s7 + $0x1b8] sm:$0x7] }
  0xa4   : > { %v494_v57 = vsel %vm419_vm0, %v492_v43, %v493_v48  ;;  %v341_v60 = vmul.f32 %v3143_v5, %v241_v46  ;;  %2722 = vmatprep.mubr.msk.f32.mxu1 %vm1235_vm3, %v1218_v52  ;;  %v785_v0 = vsel %vm710_vm1, %v783_v49, %v784_v54  ;;  %v342_v3 = vmul.f32 %v3143_v5, %v242_v56 }
  0xa5   : > { %v1187_v62 = vadd.f32 %v3162_v25, %v1153_v53  ;;  %v572_v63 = vadd.f32 %v494_v57, %v281_v34  ;;  %v1075_v1 = vrot.slane %v922_v55, 3  ;;  %v632_v6 = vmul.f32 %v3149_v10, %v241_v46  ;;  %2761 = vmatprep.subr.mxu1 %v1592_v61 }
  0xa6   : > { %v495_v4 = vrot.slane %v341_v60, 1  ;;  %v633_v7 = vmul.f32 %v3149_v10, %v242_v56  ;;  %v923_v13 = vmul.f32 %v3156_v18, %v241_v46  ;;  %v496_v15 = vrot.slane %v342_v3, 1  ;;  %2762 = vmatpush3.msra.mxu1 %v1592_v61 }
  0xa7   : > { %v1219_v11 = vmax.f32 %v1187_v62, 0.0  ;;  %v863_v12 = vadd.f32 %v785_v0, %v572_v63  ;;  %v1076_v45 = vsel %vm1001_vm2, %v1074_v58, %v1075_v1  ;;  %v786_v16 = vrot.slane %v632_v6, 2  ;;  %2763 = vmatprep.subr.mxu1 %v1591_v9  ;;  %v247_v62 = vld [vmem:[%s3137_s7 + $0x1c0] sm:$0xff] }
  0xa8   : > { %v787_v17 = vrot.slane %v633_v7, 2  ;;  %v924_v19 = vmul.f32 %v3156_v18, %v242_v56  ;;  %v1077_v22 = vrot.slane %v923_v13, 3  ;;  %v283_v23 = vmul.f32 %v3139_v2, %v243_v8  ;;  %2764 = vmatpush3.msra.mxu1 %v1591_v9 }
  0xa9   : > { %2723 = vmatmul.mubr.msk.f32.gmra.mxu1 %vm1235_vm3, %v1219_v11  ;;  %v1154_v21 = vadd.f32 %v1076_v45, %v863_v12  ;;  %v343_v24 = vmul.f32 %v3143_v5, %v243_v8  ;;  %v497_v26 = vsel %vm419_vm0, %v495_v4, %v496_v15  ;;  %v344_v29 = vmul.f32 %v3143_v5, %v244_v14  ;;  %v248_v4 = vld [vmem:[%s3137_s7 + $0x1c8] sm:$0x7] }
  0xaa   : > { %v788_v27 = vsel %vm710_vm1, %v786_v16, %v787_v17  ;;  %v1078_v28 = vrot.slane %v924_v19, 3  ;;  %v573_v32 = vadd.f32 %v497_v26, %v282_v59  ;;  %v634_v34 = vmul.f32 %v3149_v10, %v243_v8  ;;  %2765 = vmatprep.subr.mxu1 %v1590_v20 }
  0xab   : > { %v1188_v31 = vadd.f32 %v3162_v25, %v1154_v21  ;;  %v498_v33 = vrot.slane %v343_v24, 1  ;;  %v499_v36 = vrot.slane %v344_v29, 1  ;;  %v635_v37 = vmul.f32 %v3149_v10, %v244_v14  ;;  %2766 = vmatpush3.msra.mxu1 %v1590_v20  ;;  %v250_v29 = vld [vmem:[%s3137_s7 + $0x1d8] sm:$0x7] }
  0xac   : > { %v1079_v35 = vsel %vm1001_vm2, %v1077_v22, %v1078_v28  ;;  %v925_v38 = vmul.f32 %v3156_v18, %v243_v8  ;;  %v864_v41 = vadd.f32 %v788_v27, %v573_v32  ;;  %v789_v42 = vrot.slane %v634_v34, 2  ;;  %2767 = vmatprep.subr.mxu1 %v1589_v30 }
  0xad   : > { %v1220_v40 = vmax.f32 %v1188_v31, 0.0  ;;  %v926_v43 = vmul.f32 %v3156_v18, %v244_v14  ;;  %v500_v46 = vsel %vm419_vm0, %v498_v33, %v499_v36  ;;  %v790_v47 = vrot.slane %v635_v37, 2  ;;  %2768 = vmatpush3.msra.mxu1 %v1589_v30 }
  0xae   : > { %v1080_v48 = vrot.slane %v925_v38, 3  ;;  %v284_v49 = vmul.f32 %v3139_v2, %v245_v39  ;;  %v1155_v50 = vadd.f32 %v1079_v35, %v864_v41  ;;  %v574_v51 = vadd.f32 %v500_v46, %v283_v23  ;;  %v249_v23 = vld [vmem:[%s3137_s7 + $0x1d0] sm:$0xff] }
  0xaf   : > { %2725 = vmatprep.mubr.msk.f32.mxu1 %vm1235_vm3, %v1220_v40  ;;  %v1081_v52 = vrot.slane %v926_v43, 3  ;;  %v345_v53 = vmul.f32 %v3143_v5, %v245_v39  ;;  %v791_v54 = vsel %vm710_vm1, %v789_v42, %v790_v47  ;;  %v346_v55 = vmul.f32 %v3143_v5, %v246_v44 }
  0xb0   : > { %v636_v56 = vmul.f32 %v3149_v10, %v245_v39  ;;  %v637_v57 = vmul.f32 %v3149_v10, %v246_v44  ;;  %v1189_v58 = vadd.f32 %v3162_v25, %v1155_v50  ;;  %v865_v59 = vadd.f32 %v791_v54, %v574_v51  ;;  %v251_v51 = vld [vmem:[%s3137_s7 + $0x1e0] sm:$0xff] }
  0xb1   : > { %v1082_v60 = vsel %vm1001_vm2, %v1080_v48, %v1081_v52  ;;  %v501_v61 = vrot.slane %v345_v53, 1  ;;  %v502_v63 = vrot.slane %v346_v55, 1  ;;  %v927_v3 = vmul.f32 %v3156_v18, %v245_v39 }
  0xb2   : > { %v792_v0 = vrot.slane %v636_v56, 2  ;;  %v793_v1 = vrot.slane %v637_v57, 2  ;;  %v1221_v6 = vmax.f32 %v1189_v58, 0.0  ;;  %v1156_v7 = vadd.f32 %v1082_v60, %v865_v59  ;;  %v252_v56 = vld [vmem:[%s3137_s7 + $0x1e8] sm:$0x7] }
  0xb3   : > { %v928_v8 = vmul.f32 %v3156_v18, %v246_v44  ;;  %v285_v9 = vmul.f32 %v3139_v2, %v247_v62  ;;  %v503_v11 = vsel %vm419_vm0, %v501_v61, %v502_v63  ;;  %v1083_v45 = vrot.slane %v927_v3, 3 }
  0xb4   : > { %v794_v12 = vsel %vm710_vm1, %v792_v0, %v793_v1  ;;  %v347_v13 = vmul.f32 %v3143_v5, %v247_v62  ;;  %2726 = vmatmul.mubr.msk.f32.gmra.mxu1 %vm1235_vm3, %v1221_v6  ;;  %v1190_v14 = vadd.f32 %v3162_v25, %v1156_v7  ;;  %v575_v15 = vadd.f32 %v503_v11, %v284_v49 }
  0xb5   : > { %v1084_v16 = vrot.slane %v928_v8, 3  ;;  %v348_v17 = vmul.f32 %v3143_v5, %v248_v4  ;;  %v638_v20 = vmul.f32 %v3149_v10, %v247_v62  ;;  %v639_v21 = vmul.f32 %v3149_v10, %v248_v4 }
  0xb6   : > { %v504_v19 = vrot.slane %v347_v13, 1  ;;  %v929_v22 = vmul.f32 %v3156_v18, %v247_v62  ;;  %v1222_v24 = vmax.f32 %v1190_v14, 0.0  ;;  %v866_v26 = vadd.f32 %v794_v12, %v575_v15  ;;  %v253_v12 = vld [vmem:[%s3137_s7 + $0x1f0] sm:$0xff] }
  0xb7   : > { %v1085_v27 = vsel %vm1001_vm2, %v1083_v45, %v1084_v16  ;;  %v505_v28 = vrot.slane %v348_v17, 1  ;;  %v795_v30 = vrot.slane %v638_v20, 2  ;;  %v796_v31 = vrot.slane %v639_v21, 2  ;;  %v254_v45 = vld [vmem:[%s3137_s7 + $0x1f8] sm:$0x7] }
  0xb8   : > { %v930_v32 = vmul.f32 %v3156_v18, %v248_v4  ;;  %v1086_v33 = vrot.slane %v929_v22, 3  ;;  %2728 = vmatprep.mubr.msk.f32.mxu1 %vm1235_vm3, %v1222_v24  ;;  %v1157_v34 = vadd.f32 %v1085_v27, %v866_v26  ;;  %v286_v36 = vmul.f32 %v3139_v2, %v249_v23 }
  0xb9   : > { %v506_v35 = vsel %vm419_vm0, %v504_v19, %v505_v28  ;;  %v349_v37 = vmul.f32 %v3143_v5, %v249_v23  ;;  %v797_v39 = vsel %vm710_vm1, %v795_v30, %v796_v31  ;;  %v350_v41 = vmul.f32 %v3143_v5, %v250_v29 }
  0xba   : > { %v576_v38 = vadd.f32 %v506_v35, %v285_v9  ;;  %v1087_v40 = vrot.slane %v930_v32, 3  ;;  %v1191_v42 = vadd.f32 %v3162_v25, %v1157_v34  ;;  %v640_v44 = vmul.f32 %v3149_v10, %v249_v23 }
  0xbb   : > { %v507_v43 = vrot.slane %v349_v37, 1  ;;  %v641_v46 = vmul.f32 %v3149_v10, %v250_v29  ;;  %v508_v49 = vrot.slane %v350_v41, 1  ;;  %v931_v50 = vmul.f32 %v3156_v18, %v249_v23 }
  0xbc   : > { %v867_v47 = vadd.f32 %v797_v39, %v576_v38  ;;  %v1088_v48 = vsel %vm1001_vm2, %v1086_v33, %v1087_v40  ;;  %v1223_v52 = vmax.f32 %v1191_v42, 0.0  ;;  %v798_v53 = vrot.slane %v640_v44, 2 }
  0xbd   : > { %v799_v54 = vrot.slane %v641_v46, 2  ;;  %v932_v55 = vmul.f32 %v3156_v18, %v250_v29  ;;  %v509_v58 = vsel %vm419_vm0, %v507_v43, %v508_v49  ;;  %v1089_v59 = vrot.slane %v931_v50, 3 }
  0xbe   : > { %v1158_v57 = vadd.f32 %v1088_v48, %v867_v47  ;;  %v287_v60 = vmul.f32 %v3139_v2, %v251_v51  ;;  %2729 = vmatmul.mubr.msk.f32.gmra.mxu1 %vm1235_vm3, %v1223_v52  ;;  %v577_v61 = vadd.f32 %v509_v58, %v286_v36  ;;  %v351_v0 = vmul.f32 %v3143_v5, %v251_v51 }
  0xbf   : > { %v800_v62 = vsel %vm710_vm1, %v798_v53, %v799_v54  ;;  %v1090_v63 = vrot.slane %v932_v55, 3  ;;  %v352_v3 = vmul.f32 %v3143_v5, %v252_v56  ;;  %v642_v4 = vmul.f32 %v3149_v10, %v251_v51 }
  0xc0   : > { %v1192_v1 = vadd.f32 %v3162_v25, %v1158_v57  ;;  %v643_v6 = vmul.f32 %v3149_v10, %v252_v56  ;;  %v868_v7 = vadd.f32 %v800_v62, %v577_v61  ;;  %v510_v9 = vrot.slane %v351_v0, 1 }
  0xc1   : > { %v1091_v8 = vsel %vm1001_vm2, %v1089_v59, %v1090_v63  ;;  %v933_v11 = vmul.f32 %v3156_v18, %v251_v51  ;;  %v511_v14 = vrot.slane %v352_v3, 1  ;;  %v801_v15 = vrot.slane %v642_v4, 2  ;;  %v3652_v51 = vld [vmem:[%s4107_s2 + $0x10] ss:$0 sm:$0xff] }
  0xc2   : > { %v1224_v13 = vmax.f32 %v1192_v1, 0.0  ;;  %v802_v16 = vrot.slane %v643_v6, 2  ;;  %v1159_v17 = vadd.f32 %v1091_v8, %v868_v7  ;;  %v934_v19 = vmul.f32 %v3156_v18, %v252_v56 }
  0xc3   : > { %v1092_v20 = vrot.slane %v933_v11, 3  ;;  %v288_v21 = vmul.f32 %v3139_v2, %v253_v12  ;;  %v512_v22 = vsel %vm419_vm0, %v510_v9, %v511_v14  ;;  %v353_v24 = vmul.f32 %v3143_v5, %v253_v12  ;;  %v1881_v14 = vld [vmem:[%s4107_s2 + $0x110] sm:$0xff] }
  0xc4   : > { %2731 = vmatprep.mubr.msk.f32.mxu1 %vm1235_vm3, %v1224_v13  ;;  %v803_v23 = vsel %vm710_vm1, %v801_v15, %v802_v16  ;;  %v354_v26 = vmul.f32 %v3143_v5, %v254_v45  ;;  %v1193_v27 = vadd.f32 %v3162_v25, %v1159_v17  ;;  %v578_v28 = vadd.f32 %v512_v22, %v287_v60  ;;  %v1882_v13 = vld [vmem:[%s4107_s2 + $0x118] sm:$0xff]  ;;  %v1880_v15 = vld [vmem:[%s4107_s2 + $0x108] sm:$0xff]  ;;  %v1879_v16 = vld [vmem:[%s4107_s2 + $0x100] sm:$0xff] }
  0xc5   : > { %v1093_v29 = vrot.slane %v934_v19, 3  ;;  %v644_v30 = vmul.f32 %v3149_v10, %v253_v12  ;;  %v513_v31 = vrot.slane %v353_v24, 1  ;;  %v645_v2 = vmul.f32 %v3149_v10, %v254_v45  ;;  %2817 = vmatprep.subr.mxu0 %v1882_v13  ;;  %v1878_v19 = vld [vmem:[%s4107_s2 + $0xf8] sm:$0xff]  ;;  %v1877_v22 = vld [vmem:[%s4107_s2 + $0xf0] sm:$0xff] }
  0xc6   : > { %v514_v32 = vrot.slane %v354_v26, 1  ;;  %v935_v33 = vmul.f32 %v3156_v18, %v253_v12  ;;  %v1225_v34 = vmax.f32 %v1193_v27, 0.0  ;;  %v869_v35 = vadd.f32 %v803_v23, %v578_v28  ;;  %2818 = vmatpush3.msra.mxu0 %v1882_v13  ;;  %v1876_v26 = vld [vmem:[%s4107_s2 + $0xe8] sm:$0xff]  ;;  %v1875_v28 = vld [vmem:[%s4107_s2 + $0xe0] sm:$0xff] }
  0xc7   : > { %v1094_v36 = vsel %vm1001_vm2, %v1092_v20, %v1093_v29  ;;  %v804_v37 = vrot.slane %v644_v30, 2  ;;  %v805_v5 = vrot.slane %v645_v2, 2  ;;  %v936_v39 = vmul.f32 %v3156_v18, %v254_v45  ;;  %2819 = vmatprep.subr.mxu0 %v1881_v14  ;;  %v1874_v29 = vld [vmem:[%s4107_s2 + $0xd8] sm:$0xff] }
  0xc8   : > { %v515_v38 = vsel %vm419_vm0, %v513_v31, %v514_v32  ;;  %v1095_v40 = vrot.slane %v935_v33, 3  ;;  %2732 = vmatmul.mubr.msk.f32.gmra.mxu1 %vm1235_vm3, %v1225_v34  ;;  %v1160_v41 = vadd.f32 %v1094_v36, %v869_v35  ;;  %2820 = vmatpush3.msra.mxu0 %v1881_v14  ;;  %v1873_v31 = vld [vmem:[%s4107_s2 + $0xd0] sm:$0xff]  ;;  %v1872_v33 = vld [vmem:[%s4107_s2 + $0xc8] sm:$0xff]  ;;  %v1871_v36 = vld [vmem:[%s4107_s2 + $0xc0] sm:$0xff] }
  0xc9   : > { %v579_v42 = vadd.f32 %v515_v38, %v288_v21  ;;  %v806_v43 = vsel %vm710_vm1, %v804_v37, %v805_v5  ;;  %v1096_v10 = vrot.slane %v936_v39, 3  ;;  %2821 = vmatprep.subr.mxu0 %v1880_v15  ;;  %v1870_v38 = vld [vmem:[%s4107_s2 + $0xb8] sm:$0xff] }
  0xca   : > { %v1194_v44 = vadd.f32 %v3162_v25, %v1160_v41  ;;  %2822 = vmatpush3.msra.mxu0 %v1880_v15 }
  0xcb   : > { %v870_v46 = vadd.f32 %v806_v43, %v579_v42  ;;  %v1097_v47 = vsel %vm1001_vm2, %v1095_v40, %v1096_v10  ;;  %2823 = vmatprep.subr.mxu0 %v1879_v16 }
  0xcc   : > { %v1226_v48 = vmax.f32 %v1194_v44, 0.0  ;;  %2824 = vmatpush3.msra.mxu0 %v1879_v16 }
  0xcd   : > { %v1161_v49 = vadd.f32 %v1097_v47, %v870_v46  ;;  %2825 = vmatprep.subr.mxu0 %v1878_v19  ;;  %v1869_v47 = vld [vmem:[%s4107_s2 + $0xb0] sm:$0xff] }
  0xce   : > { %2734 = vmatprep.mubr.msk.f32.mxu1 %vm1235_vm3, %v1226_v48  ;;  %2826 = vmatpush3.msra.mxu0 %v1878_v19 }
  0xcf   : > { %v1195_v50 = vadd.f32 %v3162_v25, %v1161_v49  ;;  %2827 = vmatprep.subr.mxu0 %v1877_v22 }
  0xd0   : > { %2828 = vmatpush3.msra.mxu0 %v1877_v22 }
  0xd1   : > { %v1227_v18 = vmax.f32 %v1195_v50, 0.0  ;;  %2829 = vmatprep.subr.mxu0 %v1876_v26  ;;  %v1868_v50 = vld [vmem:[%s4107_s2 + $0xa8] sm:$0xff] }
  0xd2   : > { %2830 = vmatpush3.msra.mxu0 %v1876_v26 }
  0xd3   : > { %2735 = vmatmul.mubr.msk.f32.gmra.mxu1 %vm1235_vm3, %v1227_v18  ;;  %2831 = vmatprep.subr.mxu0 %v1875_v28 }
  0xd4   : > { %2832 = vmatpush3.msra.mxu0 %v1875_v28 }
  0xd5   : > { %2833 = vmatprep.subr.mxu0 %v1874_v29 }
  0xd6   : > { %2834 = vmatpush3.msra.mxu0 %v1874_v29 }
  0xd7   : > { %2835 = vmatprep.subr.mxu0 %v1873_v31 }
  0xd8   : > { %2836 = vmatpush3.msra.mxu0 %v1873_v31 }
  0xd9   : > { %2837 = vmatprep.subr.mxu0 %v1872_v33 }
  0xda   : > { %2838 = vmatpush3.msra.mxu0 %v1872_v33 }
  0xdb   : > { %2839 = vmatprep.subr.mxu0 %v1871_v36 }
  0xdc   : > { %2840 = vmatpush3.msra.mxu0 %v1871_v36 }
  0xdd   : > { %2841 = vmatprep.subr.mxu0 %v1870_v38 }
  0xde   : > { %2842 = vmatpush3.msra.mxu0 %v1870_v38 }
  0xdf   : > { %2843 = vmatprep.subr.mxu0 %v1869_v47 }
  0xe0   : > { %2844 = vmatpush3.msra.mxu0 %v1869_v47 }
  0xe1   : > { %2845 = vmatprep.subr.mxu0 %v1868_v50 }
  0xe2   : > { %2846 = vmatpush3.msra.mxu0 %v1868_v50 }
  0xf5   : > { %v2691_v52 = vpop.f32.mrf.mxu0 }
  0xf6   : > { %v1404_v53 = vadd.f32 %v2691_v52, %v3652_v51 }
  0xf7   : > { %v1398_v54 = vpop.f32.mrf.mxu0 }
  0xf8   : > { %v1399_v55 = vadd.f32 %v3652_v51, %v1398_v54  ;;  %v1558_v57 = vmax.f32 %v1404_v53, 0.0  ;;  %v1867_v54 = vld [vmem:[%s4107_s2 + $0xa0] sm:$0xff] }
  0xf9   : > { %2847 = vmatprep.subr.mxu0 %v1867_v54 }
  0xfa   : > { %v1557_v56 = vmax.f32 %v1399_v55, 0.0  ;;  %2848 = vmatpush3.msra.mxu0 %v1867_v54 }
  0xfc   : > { %2769 = vmatprep.mubr.f32.mxu1 %v1557_v56 }
  0xfd   : > { %2770 = vmatmul.mubr.f32.vlgmr.msra.gmra.mxu1 %v1558_v57 }
 0x101   : > { %v2694_v58 = vpop.f32.mrf.mxu0 }
 0x102   : > { %v1414_v25 = vadd.f32 %v2694_v58, %v3652_v51 }
 0x103   : > { %v1408_v59 = vpop.f32.mrf.mxu0 }
 0x104   : > { %v1409_v60 = vadd.f32 %v3652_v51, %v1408_v59  ;;  %v1560_v62 = vmax.f32 %v1414_v25, 0.0 }
 0x106   : > { %v1559_v61 = vmax.f32 %v1409_v60, 0.0 }
 0x108   : > { %2772 = vmatprep.mubr.f32.mxu1 %v1559_v61 }
 0x109   : > { %2773 = vmatmul.mubr.f32.gmra.mxu1 %v1560_v62 }
 0x10b   : > { %v2697_v63 = vpop.f32.mrf.mxu0 }
 0x10c   : > { %v1424_v0 = vadd.f32 %v2697_v63, %v3652_v51 }
 0x10d   : > { %v1418_v1 = vpop.f32.mrf.mxu0 }
 0x10e   : > { %v1419_v3 = vadd.f32 %v3652_v51, %v1418_v1  ;;  %v1562_v4 = vmax.f32 %v1424_v0, 0.0 }
 0x110   : > { %v1561_v6 = vmax.f32 %v1419_v3, 0.0 }
 0x112   : > { %2775 = vmatprep.mubr.f32.mxu1 %v1561_v6 }
 0x113   : > { %2776 = vmatmul.mubr.f32.gmra.mxu1 %v1562_v4 }
 0x115   : > { %v2700_v7 = vpop.f32.mrf.mxu0 }
 0x116   : > { %v1434_v8 = vadd.f32 %v2700_v7, %v3652_v51 }
 0x117   : > { %v1428_v9 = vpop.f32.mrf.mxu0 }
 0x118   : > { %v1429_v11 = vadd.f32 %v3652_v51, %v1428_v9  ;;  %v1564_v12 = vmax.f32 %v1434_v8, 0.0 }
 0x11a   : > { %v1563_v45 = vmax.f32 %v1429_v11, 0.0 }
 0x11c   : > { %2778 = vmatprep.mubr.f32.mxu1 %v1563_v45 }
 0x11d   : > { %2779 = vmatmul.mubr.f32.gmra.mxu1 %v1564_v12 }
 0x120   : > { %v2703_v17 = vpop.f32.mrf.mxu0 }
 0x121   : > { %v1444_v20 = vadd.f32 %v2703_v17, %v3652_v51 }
 0x122   : > { %v1438_v21 = vpop.f32.mrf.mxu0 }
 0x123   : > { %v1439_v23 = vadd.f32 %v3652_v51, %v1438_v21  ;;  %v1566_v24 = vmax.f32 %v1444_v20, 0.0 }
 0x125   : > { %v1565_v27 = vmax.f32 %v1439_v23, 0.0 }
 0x127   : > { %2781 = vmatprep.mubr.f32.mxu1 %v1565_v27 }
 0x128   : > { %2782 = vmatmul.mubr.f32.gmra.mxu1 %v1566_v24 }
 0x12a   : > { %v2706_v30 = vpop.f32.mrf.mxu0 }
 0x12b   : > { %v1454_v32 = vadd.f32 %v2706_v30, %v3652_v51 }
 0x12c   : > { %v1448_v2 = vpop.f32.mrf.mxu0 }
 0x12d   : > { %v1449_v34 = vadd.f32 %v3652_v51, %v1448_v2  ;;  %v1568_v35 = vmax.f32 %v1454_v32, 0.0 }
 0x12f   : > { %v1567_v37 = vmax.f32 %v1449_v34, 0.0 }
 0x131   : > { %2784 = vmatprep.mubr.f32.mxu1 %v1567_v37 }
 0x132   : > { %2785 = vmatmul.mubr.f32.gmra.mxu1 %v1568_v35 }
 0x134   : > { %v2709_v5 = vpop.f32.mrf.mxu0 }
 0x135   : > { %v1464_v39 = vadd.f32 %v2709_v5, %v3652_v51  ;;  %v3737_v5 = vld [vmem:[%s4107_s2 + $0x98] ss:$0 sm:$0xff] }
 0x136   : > { %v1458_v40 = vpop.f32.mrf.mxu0 }
 0x137   : > { %v1459_v41 = vadd.f32 %v3652_v51, %v1458_v40  ;;  %v1570_v42 = vmax.f32 %v1464_v39, 0.0 }
 0x139   : > { %v1569_v43 = vmax.f32 %v1459_v41, 0.0 }
 0x13b   : > { %2787 = vmatprep.mubr.f32.mxu1 %v1569_v43 }
 0x13c   : > { %2788 = vmatmul.mubr.f32.gmra.mxu1 %v1570_v42 }
 0x13f   : > { %v2712_v10 = vpop.f32.mrf.mxu0 }
 0x140   : > { %v1474_v44 = vadd.f32 %v2712_v10, %v3652_v51 }
 0x141   : > { %v1468_v46 = vpop.f32.mrf.mxu0 }
 0x142   : > { %v1469_v48 = vadd.f32 %v3652_v51, %v1468_v46  ;;  %v1572_v49 = vmax.f32 %v1474_v44, 0.0 }
 0x144   : > { %v1571_v18 = vmax.f32 %v1469_v48, 0.0 }
 0x146   : > { %2790 = vmatprep.mubr.f32.mxu1 %v1571_v18 }
 0x147   : > { %2791 = vmatmul.mubr.f32.gmra.mxu1 %v1572_v49 }
 0x14a   : > { %v2715_v52 = vpop.f32.mrf.mxu1 }
 0x14b   : > { %v1484_v53 = vadd.f32 %v2715_v52, %v3652_v51 }
 0x14c   : > { %v1478_v55 = vpop.f32.mrf.mxu1 }
 0x14d   : > { %v1479_v56 = vadd.f32 %v3652_v51, %v1478_v55  ;;  %v1574_v57 = vmax.f32 %v1484_v53, 0.0 }
 0x14f   : > { %v1573_v58 = vmax.f32 %v1479_v56, 0.0 }
 0x151   : > { %2793 = vmatprep.mubr.f32.mxu1 %v1573_v58 }
 0x152   : > { %2794 = vmatmul.mubr.f32.gmra.mxu1 %v1574_v57 }
 0x154   : > { %v2718_v25 = vpop.f32.mrf.mxu1 }
 0x155   : > { %v1494_v59 = vadd.f32 %v2718_v25, %v3652_v51 }
 0x156   : > { %v1488_v60 = vpop.f32.mrf.mxu1 }
 0x157   : > { %v1489_v61 = vadd.f32 %v3652_v51, %v1488_v60  ;;  %v1576_v62 = vmax.f32 %v1494_v59, 0.0 }
 0x159   : > { %v1575_v63 = vmax.f32 %v1489_v61, 0.0 }
 0x15b   : > { %2796 = vmatprep.mubr.f32.mxu1 %v1575_v63 }
 0x15c   : > { %2797 = vmatmul.mubr.f32.gmra.mxu1 %v1576_v62 }
 0x15e   : > { %v2721_v0 = vpop.f32.mrf.mxu1 }
 0x15f   : > { %v1504_v1 = vadd.f32 %v2721_v0, %v3652_v51 }
 0x160   : > { %v1498_v3 = vpop.f32.mrf.mxu1 }
 0x161   : > { %v1499_v4 = vadd.f32 %v3652_v51, %v1498_v3  ;;  %v1578_v6 = vmax.f32 %v1504_v1, 0.0 }
 0x163   : > { %v1577_v7 = vmax.f32 %v1499_v4, 0.0 }
 0x165   : > { %2799 = vmatprep.mubr.f32.mxu1 %v1577_v7 }
 0x166   : > { %2800 = vmatmul.mubr.f32.gmra.mxu1 %v1578_v6 }
 0x169   : > { %v2724_v8 = vpop.f32.mrf.mxu1 }
 0x16a   : > { %v1514_v9 = vadd.f32 %v2724_v8, %v3652_v51 }
 0x16b   : > { %v1508_v11 = vpop.f32.mrf.mxu1 }
 0x16c   : > { %v1509_v12 = vadd.f32 %v3652_v51, %v1508_v11  ;;  %v1580_v45 = vmax.f32 %v1514_v9, 0.0 }
 0x16e   : > { %v1579_v13 = vmax.f32 %v1509_v12, 0.0 }
 0x170   : > { %2802 = vmatprep.mubr.f32.mxu1 %v1579_v13 }
 0x171   : > { %2803 = vmatmul.mubr.f32.gmra.mxu1 %v1580_v45 }
 0x174   : > { %v2727_v14 = vpop.f32.mrf.mxu1 }
 0x175   : > { %v1524_v15 = vadd.f32 %v2727_v14, %v3652_v51 }
 0x176   : > { %v1518_v16 = vpop.f32.mrf.mxu1 }
 0x177   : > { %v1519_v17 = vadd.f32 %v3652_v51, %v1518_v16  ;;  %v1582_v19 = vmax.f32 %v1524_v15, 0.0 }
 0x179   : > { %v1581_v20 = vmax.f32 %v1519_v17, 0.0 }
 0x17b   : > { %2805 = vmatprep.mubr.f32.mxu1 %v1581_v20 }
 0x17c   : > { %2806 = vmatmul.mubr.f32.gmra.mxu1 %v1582_v19 }
 0x17e   : > { %v2730_v21 = vpop.f32.mrf.mxu1 }
 0x17f   : > { %v1534_v22 = vadd.f32 %v2730_v21, %v3652_v51 }
 0x180   : > { %v1528_v23 = vpop.f32.mrf.mxu1 }
 0x181   : > { %v1529_v24 = vadd.f32 %v3652_v51, %v1528_v23  ;;  %v1584_v26 = vmax.f32 %v1534_v22, 0.0 }
 0x183   : > { %v1583_v27 = vmax.f32 %v1529_v24, 0.0 }
 0x185   : > { %2808 = vmatprep.mubr.f32.mxu1 %v1583_v27 }
 0x186   : > { %2809 = vmatmul.mubr.f32.gmra.mxu1 %v1584_v26 }
 0x188   : > { %v2733_v28 = vpop.f32.mrf.mxu1 }
 0x189   : > { %v1544_v29 = vadd.f32 %v2733_v28, %v3652_v51 }
 0x18a   : > { %v1538_v30 = vpop.f32.mrf.mxu1 }
 0x18b   : > { %v1539_v31 = vadd.f32 %v3652_v51, %v1538_v30  ;;  %v1586_v32 = vmax.f32 %v1544_v29, 0.0 }
 0x18d   : > { %v1585_v2 = vmax.f32 %v1539_v31, 0.0 }
 0x18f   : > { %2811 = vmatprep.mubr.f32.mxu1 %v1585_v2 }
 0x190   : > { %2812 = vmatmul.mubr.f32.gmra.mxu1 %v1586_v32 }
 0x193   : > { %v2736_v33 = vpop.f32.mrf.mxu1 }
 0x194   : > { %v1554_v34 = vadd.f32 %v2736_v33, %v3652_v51 }
 0x195   : > { %v1548_v35 = vpop.f32.mrf.mxu1 }
 0x196   : > { %v1549_v36 = vadd.f32 %v3652_v51, %v1548_v35  ;;  %v1588_v37 = vmax.f32 %v1554_v34, 0.0 }
 0x198   : > { %v1587_v38 = vmax.f32 %v1549_v36, 0.0 }
 0x19a   : > { %2814 = vmatprep.mubr.f32.mxu1 %v1587_v38 }
 0x19b   : > { %2815 = vmatmul.mubr.f32.gmra.mxu1 %v1588_v37 }
 0x1bd   : > { %v2771_v39 = vpop.f32.mrf.mxu1 }
 0x1be   : > { %v1682_v40 = vadd.f32 %v2771_v39, %v3737_v5 }
 0x1bf   : > { %v1676_v41 = vpop.f32.mrf.mxu1 }
 0x1c0   : > { %v1677_v42 = vadd.f32 %v3737_v5, %v1676_v41  ;;  %v1836_v10 = vmax.f32 %v1682_v40, 0.0 }
 0x1c2   : > { %v1835_v43 = vmax.f32 %v1677_v42, 0.0 }
 0x1c4   : > { %2849 = vmatprep.mubr.f32.mxu0 %v1835_v43 }
 0x1c5   : > { %2850 = vmatmul.mubr.f32.vlgmr.msra.gmra.mxu0 %v1836_v10 }
 0x1c9   : > { %v2774_v51 = vpop.f32.mrf.mxu1 }
 0x1ca   : > { %v1692_v44 = vadd.f32 %v2774_v51, %v3737_v5 }
 0x1cb   : > { %v1686_v46 = vpop.f32.mrf.mxu1 }
 0x1cc   : > { %v1687_v47 = vadd.f32 %v3737_v5, %v1686_v46  ;;  %v1838_v49 = vmax.f32 %v1692_v44, 0.0 }
 0x1ce   : > { %v1837_v48 = vmax.f32 %v1687_v47, 0.0 }
 0x1d0   : > { %2852 = vmatprep.mubr.f32.mxu0 %v1837_v48 }
 0x1d1   : > { %2853 = vmatmul.mubr.f32.gmra.mxu0 %v1838_v49 }
 0x1d3   : > { %v2777_v50 = vpop.f32.mrf.mxu1 }
 0x1d4   : > { %v1702_v18 = vadd.f32 %v2777_v50, %v3737_v5 }
 0x1d5   : > { %v1696_v52 = vpop.f32.mrf.mxu1 }
 0x1d6   : > { %v1697_v53 = vadd.f32 %v3737_v5, %v1696_v52  ;;  %v1840_v55 = vmax.f32 %v1702_v18, 0.0 }
 0x1d8   : > { %v1839_v54 = vmax.f32 %v1697_v53, 0.0 }
 0x1da   : > { %2855 = vmatprep.mubr.f32.mxu0 %v1839_v54 }
 0x1db   : > { %2856 = vmatmul.mubr.f32.gmra.mxu0 %v1840_v55 }
 0x1dd   : > { %v2780_v56 = vpop.f32.mrf.mxu1 }
 0x1de   : > { %v1712_v57 = vadd.f32 %v2780_v56, %v3737_v5 }
 0x1df   : > { %v1706_v58 = vpop.f32.mrf.mxu1 }
 0x1e0   : > { %v1707_v25 = vadd.f32 %v3737_v5, %v1706_v58  ;;  %v1842_v60 = vmax.f32 %v1712_v57, 0.0 }
 0x1e2   : > { %v1841_v59 = vmax.f32 %v1707_v25, 0.0 }
 0x1e4   : > { %2858 = vmatprep.mubr.f32.mxu0 %v1841_v59 }
 0x1e5   : > { %2859 = vmatmul.mubr.f32.gmra.mxu0 %v1842_v60 }
 0x1e8   : > { %v2783_v61 = vpop.f32.mrf.mxu1 }
 0x1e9   : > { %v1722_v62 = vadd.f32 %v2783_v61, %v3737_v5 }
 0x1ea   : > { %v1716_v63 = vpop.f32.mrf.mxu1 }
 0x1eb   : > { %v1717_v0 = vadd.f32 %v3737_v5, %v1716_v63  ;;  %v1844_v3 = vmax.f32 %v1722_v62, 0.0 }
 0x1ed   : > { %v1843_v1 = vmax.f32 %v1717_v0, 0.0 }
 0x1ef   : > { %2861 = vmatprep.mubr.f32.mxu0 %v1843_v1 }
 0x1f0   : > { %2862 = vmatmul.mubr.f32.gmra.mxu0 %v1844_v3 }
 0x1f2   : > { %v2786_v4 = vpop.f32.mrf.mxu1 }
 0x1f3   : > { %v1732_v6 = vadd.f32 %v2786_v4, %v3737_v5 }
 0x1f4   : > { %v1726_v7 = vpop.f32.mrf.mxu1 }
 0x1f5   : > { %v1727_v8 = vadd.f32 %v3737_v5, %v1726_v7  ;;  %v1846_v11 = vmax.f32 %v1732_v6, 0.0 }
 0x1f7   : > { %v1845_v9 = vmax.f32 %v1727_v8, 0.0  ;;  %v3774_v8 = vld [vmem:[%s4107_s2 + $0x120] ss:$0 sm:$0xff] }
 0x1f9   : > { %2864 = vmatprep.mubr.f32.mxu0 %v1845_v9 }
 0x1fa   : > { %2865 = vmatmul.mubr.f32.gmra.mxu0 %v1846_v11 }
 0x1fc   : > { %v2789_v12 = vpop.f32.mrf.mxu1 }
 0x1fd   : > { %v1742_v45 = vadd.f32 %v2789_v12, %v3737_v5 }
 0x1fe   : > { %v1736_v13 = vpop.f32.mrf.mxu1 }
 0x1ff   : > { %v1737_v14 = vadd.f32 %v3737_v5, %v1736_v13  ;;  %v1848_v16 = vmax.f32 %v1742_v45, 0.0 }
 0x201   : > { %v1847_v15 = vmax.f32 %v1737_v14, 0.0 }
 0x203   : > { %2867 = vmatprep.mubr.f32.mxu0 %v1847_v15 }
 0x204   : > { %2868 = vmatmul.mubr.f32.gmra.mxu0 %v1848_v16 }
 0x207   : > { %v2792_v17 = vpop.f32.mrf.mxu1 }
 0x208   : > { %v1752_v19 = vadd.f32 %v2792_v17, %v3737_v5 }
 0x209   : > { %v1746_v20 = vpop.f32.mrf.mxu1 }
 0x20a   : > { %v1747_v21 = vadd.f32 %v3737_v5, %v1746_v20  ;;  %v1850_v23 = vmax.f32 %v1752_v19, 0.0 }
 0x20c   : > { %v1849_v22 = vmax.f32 %v1747_v21, 0.0 }
 0x20e   : > { %2870 = vmatprep.mubr.f32.mxu0 %v1849_v22 }
 0x20f   : > { %2871 = vmatmul.mubr.f32.gmra.mxu0 %v1850_v23 }
 0x212   : > { %v2795_v24 = vpop.f32.mrf.mxu1 }
 0x213   : > { %v1762_v26 = vadd.f32 %v2795_v24, %v3737_v5 }
 0x214   : > { %v1756_v27 = vpop.f32.mrf.mxu1 }
 0x215   : > { %v1757_v28 = vadd.f32 %v3737_v5, %v1756_v27  ;;  %v1852_v30 = vmax.f32 %v1762_v26, 0.0 }
 0x217   : > { %v1851_v29 = vmax.f32 %v1757_v28, 0.0 }
 0x219   : > { %2873 = vmatprep.mubr.f32.mxu0 %v1851_v29 }
 0x21a   : > { %2874 = vmatmul.mubr.f32.gmra.mxu0 %v1852_v30 }
 0x21c   : > { %v2798_v31 = vpop.f32.mrf.mxu1 }
 0x21d   : > { %v1772_v32 = vadd.f32 %v2798_v31, %v3737_v5 }
 0x21e   : > { %v1766_v2 = vpop.f32.mrf.mxu1 }
 0x21f   : > { %v1767_v33 = vadd.f32 %v3737_v5, %v1766_v2  ;;  %v1854_v35 = vmax.f32 %v1772_v32, 0.0 }
 0x221   : > { %v1853_v34 = vmax.f32 %v1767_v33, 0.0 }
 0x223   : > { %2876 = vmatprep.mubr.f32.mxu0 %v1853_v34 }
 0x224   : > { %2877 = vmatmul.mubr.f32.gmra.mxu0 %v1854_v35 }
 0x226   : > { %v2801_v36 = vpop.f32.mrf.mxu1 }
 0x227   : > { %v1782_v37 = vadd.f32 %v2801_v36, %v3737_v5 }
 0x228   : > { %v1776_v38 = vpop.f32.mrf.mxu1 }
 0x229   : > { %v1777_v39 = vadd.f32 %v3737_v5, %v1776_v38  ;;  %v1856_v41 = vmax.f32 %v1782_v37, 0.0 }
 0x22b   : > { %v1855_v40 = vmax.f32 %v1777_v39, 0.0 }
 0x22d   : > { %2879 = vmatprep.mubr.f32.mxu0 %v1855_v40 }
 0x22e   : > { %2880 = vmatmul.mubr.f32.gmra.mxu0 %v1856_v41 }
 0x231   : > { %v2804_v42 = vpop.f32.mrf.mxu1 }
 0x232   : > { %v1792_v43 = vadd.f32 %v2804_v42, %v3737_v5 }
 0x233   : > { %v1786_v10 = vpop.f32.mrf.mxu1 }
 0x234   : > { %v1787_v51 = vadd.f32 %v3737_v5, %v1786_v10  ;;  %v1858_v46 = vmax.f32 %v1792_v43, 0.0 }
 0x236   : > { %v1857_v44 = vmax.f32 %v1787_v51, 0.0 }
 0x238   : > { %2882 = vmatprep.mubr.f32.mxu0 %v1857_v44 }
 0x239   : > { %2883 = vmatmul.mubr.f32.gmra.mxu0 %v1858_v46 }
 0x23c   : > { %v2807_v47 = vpop.f32.mrf.mxu1 }
 0x23d   : > { %v1802_v48 = vadd.f32 %v2807_v47, %v3737_v5 }
 0x23e   : > { %v1796_v49 = vpop.f32.mrf.mxu1 }
 0x23f   : > { %v1797_v50 = vadd.f32 %v3737_v5, %v1796_v49  ;;  %v1860_v52 = vmax.f32 %v1802_v48, 0.0 }
 0x241   : > { %v1859_v18 = vmax.f32 %v1797_v50, 0.0 }
 0x243   : > { %2885 = vmatprep.mubr.f32.mxu0 %v1859_v18 }
 0x244   : > { %2886 = vmatmul.mubr.f32.gmra.mxu0 %v1860_v52 }
 0x246   : > { %v2810_v53 = vpop.f32.mrf.mxu1 }
 0x247   : > { %v1812_v54 = vadd.f32 %v2810_v53, %v3737_v5 }
 0x248   : > { %v1806_v55 = vpop.f32.mrf.mxu1 }
 0x249   : > { %v1807_v56 = vadd.f32 %v3737_v5, %v1806_v55  ;;  %v1862_v58 = vmax.f32 %v1812_v54, 0.0 }
 0x24b   : > { %v1861_v57 = vmax.f32 %v1807_v56, 0.0 }
 0x24d   : > { %2888 = vmatprep.mubr.f32.mxu0 %v1861_v57 }
 0x24e   : > { %2889 = vmatmul.mubr.f32.gmra.mxu0 %v1862_v58 }
 0x250   : > { %v2813_v25 = vpop.f32.mrf.mxu1 }
 0x251   : > { %v1822_v59 = vadd.f32 %v2813_v25, %v3737_v5 }
 0x252   : > { %v1816_v60 = vpop.f32.mrf.mxu1 }
 0x253   : > { %v1817_v61 = vadd.f32 %v3737_v5, %v1816_v60  ;;  %v1864_v63 = vmax.f32 %v1822_v59, 0.0 }
 0x255   : > { %v1863_v62 = vmax.f32 %v1817_v61, 0.0 }
 0x257   : > { %2891 = vmatprep.mubr.f32.mxu0 %v1863_v62 }
 0x258   : > { %2892 = vmatmul.mubr.f32.gmra.mxu0 %v1864_v63 }
 0x25b   : > { %v2816_v0 = vpop.f32.mrf.mxu1 }
 0x25c   : > { %v1832_v1 = vadd.f32 %v2816_v0, %v3737_v5 }
 0x25d   : > { %v1826_v3 = vpop.f32.mrf.mxu1 }
 0x25e   : > { %v1827_v4 = vadd.f32 %v3737_v5, %v1826_v3  ;;  %v1866_v7 = vmax.f32 %v1832_v1, 0.0 }
 0x260   : > { %v1865_v6 = vmax.f32 %v1827_v4, 0.0 }
 0x262   : > { %2894 = vmatprep.mubr.f32.mxu0 %v1865_v6 }
 0x263   : > { %2895 = vmatmul.mubr.f32.gmra.mxu0 %v1866_v7 }
 0x285   : > { %v2851_v9 = vpop.f32.mrf.mxu0 }
 0x286   : > { %v3777_v11 = vadd.f32 %v2851_v9, %v3774_v8 }
 0x287   : > { %v1954_v12 = vpop.f32.mrf.mxu0 }
 0x288   : > { %2115 = vmax.xlane.f32.xlu0 %v3777_v11  ;;  %v3781_v45 = vadd.f32 %v3774_v8, %v1954_v12 }
 0x28c   : > { %2113 = vmax.xlane.f32.xlu0 %v3781_v45 }
 0x291   : > { %v2854_v5 = vpop.f32.mrf.mxu0 }
 0x292   : > { %v3785_v13 = vadd.f32 %v2854_v5, %v3774_v8 }
 0x293   : > { %v1964_v14 = vpop.f32.mrf.mxu0 }
 0x294   : > { %2119 = vmax.xlane.f32.xlu1 %v3785_v13  ;;  %v3789_v15 = vadd.f32 %v3774_v8, %v1964_v14 }
 0x298   : > { %2117 = vmax.xlane.f32.xlu1 %v3789_v15 }
 0x29b   : > { %v2857_v16 = vpop.f32.mrf.mxu0 }
 0x29c   : > { %v3793_v17 = vadd.f32 %v2857_v16, %v3774_v8 }
 0x29d   : > { %v1974_v19 = vpop.f32.mrf.mxu0 }
 0x29e   : > { %v3796_v20 = vadd.f32 %v3774_v8, %v1974_v19  ;;  %2123 = vmax.xlane.f32.xlu1 %v3793_v17 }
 0x2a0   : > { %2121 = vmax.xlane.f32.xlu0 %v3796_v20 }
 0x2a5   : > { %v2860_v21 = vpop.f32.mrf.mxu0 }
 0x2a6   : > { %v3801_v22 = vadd.f32 %v2860_v21, %v3774_v8 }
 0x2a7   : > { %v1984_v23 = vpop.f32.mrf.mxu0 }
 0x2a8   : > { %v3804_v24 = vadd.f32 %v3774_v8, %v1984_v23  ;;  %2127 = vmax.xlane.f32.xlu1 %v3801_v22 }
 0x2aa   : > { %2125 = vmax.xlane.f32.xlu0 %v3804_v24 }
 0x2b0   : > { %v2863_v26 = vpop.f32.mrf.mxu0 }
 0x2b1   : > { %v3809_v27 = vadd.f32 %v2863_v26, %v3774_v8 }
 0x2b2   : > { %v1994_v28 = vpop.f32.mrf.mxu0 }
 0x2b3   : > { %v3812_v29 = vadd.f32 %v3774_v8, %v1994_v28  ;;  %2131 = vmax.xlane.f32.xlu1 %v3809_v27 }
 0x2b5   : > { %2129 = vmax.xlane.f32.xlu0 %v3812_v29 }
 0x2ba   : > { %v2866_v30 = vpop.f32.mrf.mxu0 }
 0x2bb   : > { %v3817_v31 = vadd.f32 %v2866_v30, %v3774_v8 }
 0x2bc   : > { %v2004_v32 = vpop.f32.mrf.mxu0 }
 0x2bd   : > { %v3820_v2 = vadd.f32 %v3774_v8, %v2004_v32  ;;  %2135 = vmax.xlane.f32.xlu1 %v3817_v31 }
 0x2bf   : > { %2133 = vmax.xlane.f32.xlu0 %v3820_v2 }
 0x2c4   : > { %v2869_v33 = vpop.f32.mrf.mxu0 }
 0x2c5   : > { %v3825_v34 = vadd.f32 %v2869_v33, %v3774_v8 }
 0x2c6   : > { %v2014_v35 = vpop.f32.mrf.mxu0 }
 0x2c7   : > { %v3828_v36 = vadd.f32 %v3774_v8, %v2014_v35  ;;  %2139 = vmax.xlane.f32.xlu1 %v3825_v34 }
 0x2c9   : > { %2137 = vmax.xlane.f32.xlu0 %v3828_v36 }
 0x2cf   : > { %v2872_v37 = vpop.f32.mrf.mxu0 }
 0x2d0   : > { %v3833_v38 = vadd.f32 %v2872_v37, %v3774_v8 }
 0x2d1   : > { %v2024_v39 = vpop.f32.mrf.mxu0 }
 0x2d2   : > { %v3836_v40 = vadd.f32 %v3774_v8, %v2024_v39  ;;  %2143 = vmax.xlane.f32.xlu1 %v3833_v38 }
 0x2d4   : > { %2141 = vmax.xlane.f32.xlu0 %v3836_v40 }
 0x2da   : > { %v2875_v41 = vpop.f32.mrf.mxu0 }
 0x2db   : > { %v3841_v42 = vadd.f32 %v2875_v41, %v3774_v8 }
 0x2dc   : > { %v2034_v43 = vpop.f32.mrf.mxu0 }
 0x2dd   : > { %v3844_v10 = vadd.f32 %v3774_v8, %v2034_v43  ;;  %2147 = vmax.xlane.f32.xlu1 %v3841_v42 }
 0x2df   : > { %2145 = vmax.xlane.f32.xlu0 %v3844_v10 }
 0x2e4   : > { %v2878_v51 = vpop.f32.mrf.mxu0 }
 0x2e5   : > { %v3849_v44 = vadd.f32 %v2878_v51, %v3774_v8 }
 0x2e6   : > { %v2044_v46 = vpop.f32.mrf.mxu0 }
 0x2e7   : > { %v3852_v47 = vadd.f32 %v3774_v8, %v2044_v46  ;;  %2151 = vmax.xlane.f32.xlu1 %v3849_v44 }
 0x2e9   : > { %2149 = vmax.xlane.f32.xlu0 %v3852_v47 }
 0x2ee   : > { %v2881_v48 = vpop.f32.mrf.mxu0 }
 0x2ef   : > { %v3857_v49 = vadd.f32 %v2881_v48, %v3774_v8 }
 0x2f0   : > { %v2054_v50 = vpop.f32.mrf.mxu0 }
 0x2f1   : > { %v3860_v18 = vadd.f32 %v3774_v8, %v2054_v50  ;;  %2155 = vmax.xlane.f32.xlu1 %v3857_v49 }
 0x2f3   : > { %2153 = vmax.xlane.f32.xlu0 %v3860_v18 }
 0x2f9   : > { %v2884_v52 = vpop.f32.mrf.mxu0 }
 0x2fa   : > { %v3865_v53 = vadd.f32 %v2884_v52, %v3774_v8 }
 0x2fb   : > { %v2064_v54 = vpop.f32.mrf.mxu0 }
 0x2fc   : > { %v3868_v55 = vadd.f32 %v3774_v8, %v2064_v54  ;;  %2159 = vmax.xlane.f32.xlu1 %v3865_v53 }
 0x2fe   : > { %2157 = vmax.xlane.f32.xlu0 %v3868_v55 }
 0x304   : > { %v2887_v56 = vpop.f32.mrf.mxu0 }
 0x305   : > { %v3873_v57 = vadd.f32 %v2887_v56, %v3774_v8 }
 0x306   : > { %v2074_v58 = vpop.f32.mrf.mxu0 }
 0x307   : > { %v3876_v25 = vadd.f32 %v3774_v8, %v2074_v58  ;;  %2163 = vmax.xlane.f32.xlu1 %v3873_v57 }
 0x309   : > { %2161 = vmax.xlane.f32.xlu0 %v3876_v25 }
 0x30e   : > { %v2890_v59 = vpop.f32.mrf.mxu0 }
 0x30f   : > { %v3881_v60 = vadd.f32 %v2890_v59, %v3774_v8 }
 0x310   : > { %v2084_v61 = vpop.f32.mrf.mxu0 }
 0x311   : > { %v3884_v62 = vadd.f32 %v3774_v8, %v2084_v61  ;;  %2167 = vmax.xlane.f32.xlu1 %v3881_v60  ;;  %v2116_v63 = vpop.xlane.xlu0 %2115 }
 0x312   : > { %v2178_v0 = vsub.f32 %v3777_v11, %v2116_v63 }
 0x313   : > { %2165 = vmax.xlane.f32.xlu0 %v3884_v62 }
 0x314   : > { %v2211_v1 = vmul.f32 1.442695, %v2178_v0 }
 0x315   : > { %v2114_v3 = vpop.xlane.xlu0 %2113 }
 0x316   : > { %v2177_v4 = vsub.f32 %v3781_v45, %v2114_v3  ;;  %2920 = vpow2.f32 %v2211_v1 }
 0x318   : > { %v2893_v6 = vpop.f32.mrf.mxu0  ;;  %v2209_v7 = vmul.f32 1.442695, %v2177_v4 }
 0x319   : > { %v3891_v9 = vadd.f32 %v2893_v6, %v3774_v8 }
 0x31a   : > { %v2094_v12 = vpop.f32.mrf.mxu0  ;;  %2922 = vpow2.f32 %v2209_v7 }
 0x31b   : > { %v3894_v5 = vadd.f32 %v3774_v8, %v2094_v12  ;;  %2171 = vmax.xlane.f32.xlu1 %v3891_v9 }
 0x31d   : > { %v2120_v11 = vpop.xlane.xlu1 %2119  ;;  %2169 = vmax.xlane.f32.xlu0 %v3894_v5 }
 0x31e   : > { %v2180_v14 = vsub.f32 %v3785_v13, %v2120_v11 }
 0x320   : > { %v2215_v16 = vmul.f32 1.442695, %v2180_v14 }
 0x321   : > { %v2118_v45 = vpop.xlane.xlu1 %2117 }
 0x322   : > { %2924 = vpow2.f32 %v2215_v16  ;;  %v2179_v19 = vsub.f32 %v3789_v15, %v2118_v45 }
 0x323   : > { %v2896_v21 = vpop.f32.mrf.mxu0  ;;  %v3907_v32 = vpop.eup %2920 }
 0x324   : > { %v3901_v23 = vadd.f32 %v2896_v21, %v3774_v8  ;;  %v2213_v26 = vmul.f32 1.442695, %v2179_v19 }
 0x325   : > { %v2104_v28 = vpop.f32.mrf.mxu0 }
 0x326   : > { %v3904_v30 = vadd.f32 %v3774_v8, %v2104_v28  ;;  %2175 = vmax.xlane.f32.xlu1 %v3901_v23  ;;  %2926 = vpow2.f32 %v2213_v26 }
 0x327   : > { %v2124_v13 = vpop.xlane.xlu1 %2123  ;;  %v3911_v15 = vpop.eup %2922 }
 0x328   : > { %2173 = vmax.xlane.f32.xlu0 %v3904_v30  ;;  %v2182_v33 = vsub.f32 %v3793_v17, %v2124_v13 }
 0x329   : > { %v2122_v35 = vpop.xlane.xlu0 %2121 }
 0x32a   : > { %v2181_v37 = vsub.f32 %v3796_v20, %v2122_v35  ;;  %v2219_v39 = vmul.f32 1.442695, %v2182_v33  ;;  %2275 = vadd.xlane.f32.xlu1 %v3907_v32 }
 0x32c   : > { %v2217_v8 = vmul.f32 1.442695, %v2181_v37  ;;  %2928 = vpow2.f32 %v2219_v39  ;;  %2273 = vadd.xlane.f32.xlu0 %v3911_v15 }
 0x32e   : > { %2930 = vpow2.f32 %v2217_v8 }
 0x32f   : > { %v3916_v41 = vpop.eup %2924 }
 0x330   : > { %2279 = vadd.xlane.f32.xlu1 %v3916_v41 }
 0x331   : > { %v2128_v43 = vpop.xlane.xlu1 %2127 }
 0x332   : > { %v2184_v17 = vsub.f32 %v3801_v22, %v2128_v43 }
 0x333   : > { %v3920_v51 = vpop.eup %2926  ;;  %v2126_v46 = vpop.xlane.xlu0 %2125 }
 0x334   : > { %v2183_v20 = vsub.f32 %v3804_v24, %v2126_v46  ;;  %v2223_v48 = vmul.f32 1.442695, %v2184_v17  ;;  %2277 = vadd.xlane.f32.xlu0 %v3920_v51 }
 0x336   : > { %v2221_v50 = vmul.f32 1.442695, %v2183_v20  ;;  %2932 = vpow2.f32 %v2223_v48 }
 0x338   : > { %2934 = vpow2.f32 %v2221_v50 }
 0x339   : > { %v3924_v52 = vpop.eup %2928 }
 0x33a   : > { %2283 = vadd.xlane.f32.xlu1 %v3924_v52 }
 0x33b   : > { %v3927_v54 = vpop.eup %2930 }
 0x33c   : > { %2281 = vadd.xlane.f32.xlu0 %v3927_v54  ;;  %v2132_v22 = vpop.xlane.xlu1 %2131 }
 0x33d   : > { %v2186_v56 = vsub.f32 %v3809_v27, %v2132_v22 }
 0x33e   : > { %v2130_v58 = vpop.xlane.xlu0 %2129 }
 0x33f   : > { %v2185_v24 = vsub.f32 %v3812_v29, %v2130_v58  ;;  %v2227_v59 = vmul.f32 1.442695, %v2186_v56 }
 0x341   : > { %v2225_v61 = vmul.f32 1.442695, %v2185_v24  ;;  %2936 = vpow2.f32 %v2227_v59 }
 0x343   : > { %v3932_v63 = vpop.eup %2932  ;;  %2938 = vpow2.f32 %v2225_v61 }
 0x344   : > { %2287 = vadd.xlane.f32.xlu1 %v3932_v63 }
 0x345   : > { %v3935_v0 = vpop.eup %2934 }
 0x346   : > { %2285 = vadd.xlane.f32.xlu0 %v3935_v0  ;;  %v2136_v1 = vpop.xlane.xlu1 %2135 }
 0x347   : > { %v2188_v3 = vsub.f32 %v3817_v31, %v2136_v1 }
 0x348   : > { %v2134_v4 = vpop.xlane.xlu0 %2133 }
 0x349   : > { %v2187_v27 = vsub.f32 %v3820_v2, %v2134_v4  ;;  %v2231_v6 = vmul.f32 1.442695, %v2188_v3 }
 0x34b   : > { %v2229_v29 = vmul.f32 1.442695, %v2187_v27  ;;  %2940 = vpow2.f32 %v2231_v6 }
 0x34d   : > { %2942 = vpow2.f32 %v2229_v29 }
 0x34e   : > { %v3940_v7 = vpop.eup %2936 }
 0x34f   : > { %2291 = vadd.xlane.f32.xlu1 %v3940_v7 }
 0x350   : > { %v3943_v12 = vpop.eup %2938  ;;  %v2140_v11 = vpop.xlane.xlu1 %2139 }
 0x351   : > { %v2190_v14 = vsub.f32 %v3825_v34, %v2140_v11  ;;  %2289 = vadd.xlane.f32.xlu0 %v3943_v12 }
 0x352   : > { %v2138_v16 = vpop.xlane.xlu0 %2137 }
 0x353   : > { %v2189_v31 = vsub.f32 %v3828_v36, %v2138_v16  ;;  %v2235_v45 = vmul.f32 1.442695, %v2190_v14 }
 0x355   : > { %v2233_v2 = vmul.f32 1.442695, %v2189_v31  ;;  %2944 = vpow2.f32 %v2235_v45 }
 0x357   : > { %2946 = vpow2.f32 %v2233_v2 }
 0x358   : > { %v3948_v19 = vpop.eup %2940 }
 0x359   : > { %2295 = vadd.xlane.f32.xlu1 %v3948_v19 }
 0x35a   : > { %v3951_v21 = vpop.eup %2942 }
 0x35b   : > { %v2144_v26 = vpop.xlane.xlu1 %2143  ;;  %2293 = vadd.xlane.f32.xlu0 %v3951_v21 }
 0x35c   : > { %v2192_v28 = vsub.f32 %v3833_v38, %v2144_v26 }
 0x35d   : > { %v2142_v34 = vpop.xlane.xlu0 %2141 }
 0x35e   : > { %v2191_v13 = vsub.f32 %v3836_v40, %v2142_v34  ;;  %v2239_v33 = vmul.f32 1.442695, %v2192_v28 }
 0x360   : > { %v2237_v36 = vmul.f32 1.442695, %v2191_v13  ;;  %2948 = vpow2.f32 %v2239_v33 }
 0x362   : > { %2950 = vpow2.f32 %v2237_v36  ;;  %v3956_v35 = vpop.eup %2944 }
 0x363   : > { %2299 = vadd.xlane.f32.xlu1 %v3956_v35 }
 0x364   : > { %v3959_v37 = vpop.eup %2946 }
 0x365   : > { %2297 = vadd.xlane.f32.xlu0 %v3959_v37 }
 0x366   : > { %v2148_v39 = vpop.xlane.xlu1 %2147 }
 0x367   : > { %v2194_v38 = vsub.f32 %v3841_v42, %v2148_v39 }
 0x368   : > { %v2146_v8 = vpop.xlane.xlu0 %2145 }
 0x369   : > { %v2193_v43 = vsub.f32 %v3844_v10, %v2146_v8  ;;  %v2243_v17 = vmul.f32 1.442695, %v2194_v38 }
 0x36b   : > { %v2241_v40 = vmul.f32 1.442695, %v2193_v43  ;;  %2952 = vpow2.f32 %v2243_v17 }
 0x36d   : > { %v3964_v46 = vpop.eup %2948  ;;  %2954 = vpow2.f32 %v2241_v40 }
 0x36e   : > { %2303 = vadd.xlane.f32.xlu1 %v3964_v46 }
 0x36f   : > { %v3967_v20 = vpop.eup %2950 }
 0x370   : > { %2301 = vadd.xlane.f32.xlu0 %v3967_v20  ;;  %v2152_v48 = vpop.xlane.xlu1 %2151 }
 0x371   : > { %v2196_v50 = vsub.f32 %v3849_v44, %v2152_v48 }
 0x372   : > { %v2150_v22 = vpop.xlane.xlu0 %2149 }
 0x373   : > { %v2195_v42 = vsub.f32 %v3852_v47, %v2150_v22  ;;  %v2247_v56 = vmul.f32 1.442695, %v2196_v50 }
 0x375   : > { %v2245_v10 = vmul.f32 1.442695, %v2195_v42  ;;  %2956 = vpow2.f32 %v2247_v56 }
 0x377   : > { %2958 = vpow2.f32 %v2245_v10 }
 0x378   : > { %v3972_v58 = vpop.eup %2952 }
 0x379   : > { %2307 = vadd.xlane.f32.xlu1 %v3972_v58 }
 0x37a   : > { %v3975_v24 = vpop.eup %2954  ;;  %v2156_v59 = vpop.xlane.xlu1 %2155 }
 0x37b   : > { %v2198_v61 = vsub.f32 %v3857_v49, %v2156_v59  ;;  %2305 = vadd.xlane.f32.xlu0 %v3975_v24 }
 0x37c   : > { %v2154_v1 = vpop.xlane.xlu0 %2153 }
 0x37d   : > { %v2197_v44 = vsub.f32 %v3860_v18, %v2154_v1  ;;  %v2251_v3 = vmul.f32 1.442695, %v2198_v61 }
 0x37f   : > { %v2249_v47 = vmul.f32 1.442695, %v2197_v44  ;;  %2960 = vpow2.f32 %v2251_v3 }
 0x381   : > { %2962 = vpow2.f32 %v2249_v47 }
 0x382   : > { %v3980_v4 = vpop.eup %2956 }
 0x383   : > { %2311 = vadd.xlane.f32.xlu1 %v3980_v4 }
 0x384   : > { %v3983_v27 = vpop.eup %2958 }
 0x385   : > { %v2160_v6 = vpop.xlane.xlu1 %2159  ;;  %2309 = vadd.xlane.f32.xlu0 %v3983_v27 }
 0x386   : > { %v2200_v29 = vsub.f32 %v3865_v53, %v2160_v6 }
 0x387   : > { %v2158_v49 = vpop.xlane.xlu0 %2157 }
 0x388   : > { %v2199_v11 = vsub.f32 %v3868_v55, %v2158_v49  ;;  %v2255_v14 = vmul.f32 1.442695, %v2200_v29 }
 0x38a   : > { %v2253_v18 = vmul.f32 1.442695, %v2199_v11  ;;  %2964 = vpow2.f32 %v2255_v14 }
 0x38c   : > { %2966 = vpow2.f32 %v2253_v18  ;;  %v3988_v16 = vpop.eup %2960 }
 0x38d   : > { %2315 = vadd.xlane.f32.xlu1 %v3988_v16 }
 0x38e   : > { %v3991_v31 = vpop.eup %2962 }
 0x38f   : > { %2313 = vadd.xlane.f32.xlu0 %v3991_v31 }
 0x390   : > { %v2164_v45 = vpop.xlane.xlu1 %2163 }
 0x391   : > { %v2202_v53 = vsub.f32 %v3873_v57, %v2164_v45 }
 0x392   : > { %v2162_v2 = vpop.xlane.xlu0 %2161 }
 0x393   : > { %v2201_v26 = vsub.f32 %v3876_v25, %v2162_v2  ;;  %v2259_v28 = vmul.f32 1.442695, %v2202_v53 }
 0x395   : > { %v2257_v55 = vmul.f32 1.442695, %v2201_v26  ;;  %2968 = vpow2.f32 %v2259_v28 }
 0x397   : > { %v3996_v34 = vpop.eup %2964  ;;  %2970 = vpow2.f32 %v2257_v55 }
 0x398   : > { %2319 = vadd.xlane.f32.xlu1 %v3996_v34 }
 0x399   : > { %v3999_v13 = vpop.eup %2966 }
 0x39a   : > { %2317 = vadd.xlane.f32.xlu0 %v3999_v13  ;;  %v2168_v33 = vpop.xlane.xlu1 %2167 }
 0x39b   : > { %v2204_v36 = vsub.f32 %v3881_v60, %v2168_v33 }
 0x39c   : > { %v2166_v39 = vpop.xlane.xlu0 %2165 }
 0x39d   : > { %v2203_v57 = vsub.f32 %v3884_v62, %v2166_v39  ;;  %v2263_v38 = vmul.f32 1.442695, %v2204_v36 }
 0x39f   : > { %v2261_v25 = vmul.f32 1.442695, %v2203_v57  ;;  %2972 = vpow2.f32 %v2263_v38 }
 0x3a1   : > { %2974 = vpow2.f32 %v2261_v25 }
 0x3a2   : > { %v4004_v8 = vpop.eup %2968 }
 0x3a3   : > { %2323 = vadd.xlane.f32.xlu1 %v4004_v8 }
 0x3a4   : > { %v4007_v43 = vpop.eup %2970  ;;  %v2172_v17 = vpop.xlane.xlu1 %2171 }
 0x3a5   : > { %v2206_v40 = vsub.f32 %v3891_v9, %v2172_v17  ;;  %2321 = vadd.xlane.f32.xlu0 %v4007_v43 }
 0x3a6   : > { %v2170_v48 = vpop.xlane.xlu0 %2169 }
 0x3a7   : > { %v2205_v60 = vsub.f32 %v3894_v5, %v2170_v48  ;;  %v2267_v50 = vmul.f32 1.442695, %v2206_v40 }
 0x3a9   : > { %v2265_v62 = vmul.f32 1.442695, %v2205_v60  ;;  %2976 = vpow2.f32 %v2267_v50 }
 0x3ab   : > { %2978 = vpow2.f32 %v2265_v62 }
 0x3ac   : > { %v4012_v22 = vpop.eup %2972 }
 0x3ad   : > { %2327 = vadd.xlane.f32.xlu1 %v4012_v22 }
 0x3ae   : > { %v4015_v42 = vpop.eup %2974 }
 0x3af   : > { %v2176_v56 = vpop.xlane.xlu1 %2175  ;;  %2325 = vadd.xlane.f32.xlu0 %v4015_v42 }
 0x3b0   : > { %v2208_v10 = vsub.f32 %v3901_v23, %v2176_v56 }
 0x3b1   : > { %v2174_v9 = vpop.xlane.xlu0 %2173 }
 0x3b2   : > { %v2207_v59 = vsub.f32 %v3904_v30, %v2174_v9  ;;  %v2271_v61 = vmul.f32 1.442695, %v2208_v10 }
 0x3b3   : > { %v2276_v5 = vpop.xlane.xlu1 %2275 }
 0x3b4   : > { %v2269_v1 = vmul.f32 1.442695, %v2207_v59  ;;  %2980 = vpow2.f32 %v2271_v61 }
 0x3b5   : > { %2982 = vrcp.f32 %v2276_v5  ;;  %v2274_v44 = vpop.xlane.xlu0 %2273 }
 0x3b6   : > { %2984 = vpow2.f32 %v2269_v1  ;;  %v4020_v3 = vpop.eup %2976 }
 0x3b7   : > { %2986 = vrcp.f32 %v2274_v44  ;;  %2331 = vadd.xlane.f32.xlu1 %v4020_v3 }
 0x3b8   : > { %v4023_v47 = vpop.eup %2978 }
 0x3b9   : > { %v2280_v23 = vpop.xlane.xlu1 %2279  ;;  %2329 = vadd.xlane.f32.xlu0 %v4023_v47 }
 0x3ba   : > { %2988 = vrcp.f32 %v2280_v23 }
 0x3bd   : > { %v2278_v30 = vpop.xlane.xlu0 %2277 }
 0x3be   : > { %2990 = vrcp.f32 %v2278_v30 }
 0x3c1   : > { %v4027_v6 = vpop.eup %2980 }
 0x3c2   : > { %v2983_v29 = vpop.eup %2982  ;;  %2335 = vadd.xlane.f32.xlu1 %v4027_v6 }
 0x3c3   : > { %v4035_v49 = vpop.eup %2984  ;;  %v2370_v11 = vmul.f32 %v2983_v29, %v3907_v32  ;;  %v2284_v14 = vpop.xlane.xlu1 %2283 }
 0x3c4   : > { %v2987_v18 = vpop.eup %2986  ;;  %2333 = vadd.xlane.f32.xlu0 %v4035_v49  ;;  %2992 = vrcp.f32 %v2284_v14 }
 0x3c5   : > { %2402 = vst [vmem:[%s4033_s6 + $0x8] sm:$0xff] %v2370_v11  ;;  %v2369_v45 = vmul.f32 %v2987_v18, %v3911_v15  ;;  %v2282_v53 = vpop.xlane.xlu0 %2281 }
 0x3c6   : > { %2994 = vrcp.f32 %v2282_v53 }
 0x3c7   : > { %v2989_v2 = vpop.eup %2988  ;;  %2401 = vst [vmem:[%s4033_s6] sm:$0xff] %v2369_v45 }
 0x3c8   : > { %v2372_v26 = vmul.f32 %v2989_v2, %v3916_v41 }
 0x3ca   : > { %2404 = vst [vmem:[%s4033_s6 + $0x18] sm:$0xff] %v2372_v26 }
 0x3cb   : > { %v2991_v28 = vpop.eup %2990 }
 0x3cc   : > { %v2371_v32 = vmul.f32 %v2991_v28, %v3920_v51 }
 0x3cd   : > { %v2288_v55 = vpop.xlane.xlu1 %2287 }
 0x3ce   : > { %2403 = vst [vmem:[%s4033_s6 + $0x10] sm:$0xff] %v2371_v32  ;;  %2996 = vrcp.f32 %v2288_v55 }
 0x3cf   : > { %v2286_v33 = vpop.xlane.xlu0 %2285 }
 0x3d0   : > { %2998 = vrcp.f32 %v2286_v33 }
 0x3d1   : > { %v2993_v15 = vpop.eup %2992 }
 0x3d2   : > { %v2374_v36 = vmul.f32 %v2993_v15, %v3924_v52 }
 0x3d3   : > { %v2995_v39 = vpop.eup %2994 }
 0x3d4   : > { %2406 = vst [vmem:[%s4033_s6 + $0x28] sm:$0xff] %v2374_v36  ;;  %v2373_v57 = vmul.f32 %v2995_v39, %v3927_v54 }
 0x3d6   : > { %2405 = vst [vmem:[%s4033_s6 + $0x20] sm:$0xff] %v2373_v57 }
 0x3d8   : > { %v2292_v41 = vpop.xlane.xlu1 %2291 }
 0x3d9   : > { %3000 = vrcp.f32 %v2292_v41 }
 0x3da   : > { %v2290_v51 = vpop.xlane.xlu0 %2289 }
 0x3db   : > { %v2997_v38 = vpop.eup %2996  ;;  %3002 = vrcp.f32 %v2290_v51 }
 0x3dc   : > { %v2376_v25 = vmul.f32 %v2997_v38, %v3932_v63 }
 0x3dd   : > { %v2999_v17 = vpop.eup %2998 }
 0x3de   : > { %2408 = vst [vmem:[%s4033_s6 + $0x38] sm:$0xff] %v2376_v25  ;;  %v2375_v40 = vmul.f32 %v2999_v17, %v3935_v0 }
 0x3e0   : > { %2407 = vst [vmem:[%s4033_s6 + $0x30] sm:$0xff] %v2375_v40 }
 0x3e2   : > { %v2296_v52 = vpop.xlane.xlu1 %2295 }
 0x3e3   : > { %3004 = vrcp.f32 %v2296_v52 }
 0x3e4   : > { %v2294_v48 = vpop.xlane.xlu0 %2293 }
 0x3e5   : > { %3006 = vrcp.f32 %v2294_v48 }
 0x3e6   : > { %v3001_v54 = vpop.eup %3000 }
 0x3e7   : > { %v2378_v60 = vmul.f32 %v3001_v54, %v3940_v7 }
 0x3e8   : > { %v3003_v50 = vpop.eup %3002 }
 0x3e9   : > { %2410 = vst [vmem:[%s4033_s6 + $0x48] sm:$0xff] %v2378_v60  ;;  %v2377_v62 = vmul.f32 %v3003_v50, %v3943_v12 }
 0x3eb   : > { %2409 = vst [vmem:[%s4033_s6 + $0x40] sm:$0xff] %v2377_v62 }
 0x3ec   : > { %v2300_v63 = vpop.xlane.xlu1 %2299 }
 0x3ed   : > { %3008 = vrcp.f32 %v2300_v63 }
 0x3ee   : > { %v2298_v56 = vpop.xlane.xlu0 %2297 }
 0x3ef   : > { %3010 = vrcp.f32 %v2298_v56 }
 0x3f0   : > { %v3005_v0 = vpop.eup %3004 }
 0x3f1   : > { %v2380_v10 = vmul.f32 %v3005_v0, %v3948_v19 }
 0x3f2   : > { %v3007_v9 = vpop.eup %3006 }
 0x3f3   : > { %2412 = vst [vmem:[%s4033_s6 + $0x58] sm:$0xff] %v2380_v10  ;;  %v2379_v59 = vmul.f32 %v3007_v9, %v3951_v21 }
 0x3f5   : > { %2411 = vst [vmem:[%s4033_s6 + $0x50] sm:$0xff] %v2379_v59 }
 0x3f7   : > { %v2304_v7 = vpop.xlane.xlu1 %2303 }
 0x3f8   : > { %3012 = vrcp.f32 %v2304_v7 }
 0x3f9   : > { %v2302_v61 = vpop.xlane.xlu0 %2301 }
 0x3fa   : > { %3014 = vrcp.f32 %v2302_v61  ;;  %v3009_v12 = vpop.eup %3008 }
 0x3fb   : > { %v2382_v5 = vmul.f32 %v3009_v12, %v3956_v35 }
 0x3fc   : > { %v3011_v1 = vpop.eup %3010 }
 0x3fd   : > { %2414 = vst [vmem:[%s4033_s6 + $0x68] sm:$0xff] %v2382_v5  ;;  %v2381_v44 = vmul.f32 %v3011_v1, %v3959_v37 }
 0x3ff   : > { %2413 = vst [vmem:[%s4033_s6 + $0x60] sm:$0xff] %v2381_v44 }
 0x402   : > { %v2308_v19 = vpop.xlane.xlu1 %2307 }
 0x403   : > { %3016 = vrcp.f32 %v2308_v19 }
 0x404   : > { %v2306_v21 = vpop.xlane.xlu0 %2305 }
 0x405   : > { %v3013_v23 = vpop.eup %3012  ;;  %3018 = vrcp.f32 %v2306_v21 }
 0x406   : > { %v2384_v30 = vmul.f32 %v3013_v23, %v3964_v46 }
 0x407   : > { %v3015_v29 = vpop.eup %3014 }
 0x408   : > { %2416 = vst [vmem:[%s4033_s6 + $0x78] sm:$0xff] %v2384_v30  ;;  %v2383_v11 = vmul.f32 %v3015_v29, %v3967_v20 }
 0x40a   : > { %2415 = vst [vmem:[%s4033_s6 + $0x70] sm:$0xff] %v2383_v11 }
 0x40c   : > { %v2312_v35 = vpop.xlane.xlu1 %2311 }
 0x40d   : > { %3020 = vrcp.f32 %v2312_v35 }
 0x40e   : > { %v2310_v14 = vpop.xlane.xlu0 %2309 }
 0x40f   : > { %3022 = vrcp.f32 %v2310_v14 }
 0x410   : > { %v3017_v37 = vpop.eup %3016 }
 0x411   : > { %v2386_v18 = vmul.f32 %v3017_v37, %v3972_v58 }
 0x412   : > { %v3019_v45 = vpop.eup %3018 }
 0x413   : > { %2418 = vst [vmem:[%s4033_s6 + $0x88] sm:$0xff] %v2386_v18  ;;  %v2385_v53 = vmul.f32 %v3019_v45, %v3975_v24 }
 0x415   : > { %2417 = vst [vmem:[%s4033_s6 + $0x80] sm:$0xff] %v2385_v53 }
 0x416   : > { %v2316_v46 = vpop.xlane.xlu1 %2315 }
 0x417   : > { %3024 = vrcp.f32 %v2316_v46 }
 0x418   : > { %v2314_v2 = vpop.xlane.xlu0 %2313 }
 0x419   : > { %3026 = vrcp.f32 %v2314_v2 }
 0x41a   : > { %v3021_v20 = vpop.eup %3020 }
 0x41b   : > { %v2388_v26 = vmul.f32 %v3021_v20, %v3980_v4 }
 0x41c   : > { %v3023_v28 = vpop.eup %3022 }
 0x41d   : > { %2420 = vst [vmem:[%s4033_s6 + $0x98] sm:$0xff] %v2388_v26  ;;  %v2387_v32 = vmul.f32 %v3023_v28, %v3983_v27 }
 0x41f   : > { %2419 = vst [vmem:[%s4033_s6 + $0x90] sm:$0xff] %v2387_v32 }
 0x421   : > { %v2320_v58 = vpop.xlane.xlu1 %2319 }
 0x422   : > { %3028 = vrcp.f32 %v2320_v58 }
 0x423   : > { %v2318_v55 = vpop.xlane.xlu0 %2317 }
 0x424   : > { %3030 = vrcp.f32 %v2318_v55  ;;  %v3025_v24 = vpop.eup %3024 }
 0x425   : > { %v2390_v33 = vmul.f32 %v3025_v24, %v3988_v16 }
 0x426   : > { %v3027_v15 = vpop.eup %3026 }
 0x427   : > { %2422 = vst [vmem:[%s4033_s6 + $0xa8] sm:$0xff] %v2390_v33  ;;  %v2389_v36 = vmul.f32 %v3027_v15, %v3991_v31 }
 0x429   : > { %2421 = vst [vmem:[%s4033_s6 + $0xa0] sm:$0xff] %v2389_v36 }
 0x42c   : > { %v2324_v4 = vpop.xlane.xlu1 %2323 }
 0x42d   : > { %3032 = vrcp.f32 %v2324_v4 }
 0x42e   : > { %v2322_v27 = vpop.xlane.xlu0 %2321 }
 0x42f   : > { %v3029_v39 = vpop.eup %3028  ;;  %3034 = vrcp.f32 %v2322_v27 }
 0x430   : > { %v2392_v57 = vmul.f32 %v3029_v39, %v3996_v34 }
 0x431   : > { %v3031_v41 = vpop.eup %3030 }
 0x432   : > { %2424 = vst [vmem:[%s4033_s6 + $0xb8] sm:$0xff] %v2392_v57  ;;  %v2391_v38 = vmul.f32 %v3031_v41, %v3999_v13 }
 0x434   : > { %2423 = vst [vmem:[%s4033_s6 + $0xb0] sm:$0xff] %v2391_v38 }
 0x436   : > { %v2328_v16 = vpop.xlane.xlu1 %2327 }
 0x437   : > { %3036 = vrcp.f32 %v2328_v16 }
 0x438   : > { %v2326_v51 = vpop.xlane.xlu0 %2325 }
 0x439   : > { %3038 = vrcp.f32 %v2326_v51 }
 0x43a   : > { %v3033_v31 = vpop.eup %3032 }
 0x43b   : > { %v2394_v25 = vmul.f32 %v3033_v31, %v4004_v8 }
 0x43c   : > { %v3035_v17 = vpop.eup %3034 }
 0x43d   : > { %2426 = vst [vmem:[%s4033_s6 + $0xc8] sm:$0xff] %v2394_v25  ;;  %v2393_v40 = vmul.f32 %v3035_v17, %v4007_v43 }
 0x43f   : > { %2425 = vst [vmem:[%s4033_s6 + $0xc0] sm:$0xff] %v2393_v40 }
 0x440   : > { %v2332_v34 = vpop.xlane.xlu1 %2331 }
 0x441   : > { %3040 = vrcp.f32 %v2332_v34 }
 0x442   : > { %v2330_v52 = vpop.xlane.xlu0 %2329 }
 0x443   : > { %3042 = vrcp.f32 %v2330_v52 }
 0x444   : > { %v3037_v13 = vpop.eup %3036 }
 0x445   : > { %v2396_v48 = vmul.f32 %v3037_v13, %v4012_v22 }
 0x446   : > { %v3039_v54 = vpop.eup %3038 }
 0x447   : > { %2428 = vst [vmem:[%s4033_s6 + $0xd8] sm:$0xff] %v2396_v48  ;;  %v2395_v60 = vmul.f32 %v3039_v54, %v4015_v42 }
 0x449   : > { %2427 = vst [vmem:[%s4033_s6 + $0xd0] sm:$0xff] %v2395_v60 }
 0x44b   : > { %v2336_v8 = vpop.xlane.xlu1 %2335 }
 0x44c   : > { %3044 = vrcp.f32 %v2336_v8 }
 0x44d   : > { %v2334_v43 = vpop.xlane.xlu0 %2333 }
 0x44e   : > { %3046 = vrcp.f32 %v2334_v43  ;;  %v3041_v50 = vpop.eup %3040 }
 0x44f   : > { %v2398_v62 = vmul.f32 %v3041_v50, %v4020_v3 }
 0x450   : > { %v3043_v63 = vpop.eup %3042 }
 0x451   : > { %2430 = vst [vmem:[%s4033_s6 + $0xe8] sm:$0xff] %v2398_v62  ;;  %v2397_v56 = vmul.f32 %v3043_v63, %v4023_v47 }
 0x453   : > { %2429 = vst [vmem:[%s4033_s6 + $0xe0] sm:$0xff] %v2397_v56 }
 0x459   : > { %v3045_v22 = vpop.eup %3044 }
 0x45a   : > { %v2400_v0 = vmul.f32 %v3045_v22, %v4027_v6 }
 0x45b   : > { %v3047_v10 = vpop.eup %3046 }
 0x45c   : > { %2432 = vst [vmem:[%s4033_s6 + $0xf8] sm:$0xff] %v2400_v0  ;;  %v2399_v42 = vmul.f32 %v3047_v10, %v4035_v49 }
 0x45e   : > { %2431 = vst [vmem:[%s4033_s6 + $0xf0] sm:$0xff] %v2399_v42 }
 0x45f PF: > { %s14_s12 = sadd.s32 1, %s3073_s12  }
 0x460   : > { %p11_p1 = scmp.ge.s32.totalorder %s14_s12, 4  }
 0x462   :  { %13 = sbr.rel (!%p11_p1) target bundleno = 1 (0x1), region = 67 }
 0x467   :  { %2455 = vsyncpa [#allocation3], 1 }
 0x468   :  { %2457 = vsyncpa [#allocation3 + $0x1], 1 }

</bundles_post_ra>
